<compile_context>
chip_gen: v6e
topology: v6e:2x2x1
jax: 0.10.0
libtpu: 0.0.40
codegen_flags: <defaults>
</compile_context>

<pallas_src>
import jax
import jax.numpy as jnp
from jax.experimental import pallas as pl
from jax.experimental.pallas import tpu as pltpu

INPUT_DIM = 2048
HIDDEN_DIM = 512
OUTPUT_DIM = 3
OUT_PAD = 128      # pad fc2 output to a full lane width (unmasked stores)
MAX_TB = 512       # batch tile size for large B (approaches HBM roofline)


def _discriminator_kernel(x_ref, w1_ref, b1_ref, w2_ref, b2_ref, o_ref):
    # fc1: [TB, D_in](bf16) @ [D_in, H](bf16) -> f32 acc, + bias, ReLU
    h = jnp.dot(x_ref[...], w1_ref[...], preferred_element_type=jnp.float32)
    h = jnp.maximum(h + b1_ref[...], 0.0)
    # (Dropout(0.5) -> identity in eval mode)
    # fc2: [TB, H](bf16) @ [H, OUT_PAD](bf16) -> f32 acc, + bias
    o = jnp.dot(h.astype(jnp.bfloat16), w2_ref[...],
                preferred_element_type=jnp.float32)
    o_ref[...] = (o + b2_ref[...]).astype(o_ref.dtype)


@jax.jit
def discriminator_forward(feature_bf16, w1_t, b1, w2_t_pad, b2_pad):
    """feature_bf16: [B, INPUT_DIM] bf16 (producer should emit bf16 directly).

    Weights bf16 (pre-transposed / lane-padded), biases f32.
    Returns [B, OUTPUT_DIM] f32 logits.
    """
    B = feature_bf16.shape[0]
    TB = B if B <= MAX_TB else MAX_TB
    grid = (pl.cdiv(B, TB),)

    flops = 2 * B * INPUT_DIM * HIDDEN_DIM + 2 * B * HIDDEN_DIM * OUT_PAD
    bytes_accessed = (
        feature_bf16.size * feature_bf16.dtype.itemsize
        + w1_t.size * w1_t.dtype.itemsize
        + b1.size * b1.dtype.itemsize
        + w2_t_pad.size * w2_t_pad.dtype.itemsize
        + b2_pad.size * b2_pad.dtype.itemsize
        + B * OUT_PAD * 2
    )

    # Grid-invariant operands: constant index_map + single pipeline buffer.
    resident = lambda shape: pl.BlockSpec(
        shape, lambda i: (0, 0), pipeline_mode=pl.Buffered(1))

    out_pad = pl.pallas_call(
        _discriminator_kernel,
        out_shape=jax.ShapeDtypeStruct((B, OUT_PAD), jnp.bfloat16),
        grid_spec=pl.GridSpec(
            grid=grid,
            in_specs=[
                pl.BlockSpec((TB, INPUT_DIM), lambda i: (i, 0)),  # x tile (pipelined)
                resident((INPUT_DIM, HIDDEN_DIM)),                # w1 (VMEM-resident)
                resident((1, HIDDEN_DIM)),                        # b1
                resident((HIDDEN_DIM, OUT_PAD)),                  # w2 (VMEM-resident)
                resident((1, OUT_PAD)),                           # b2
            ],
            out_specs=pl.BlockSpec((TB, OUT_PAD), lambda i: (i, 0)),
        ),
        compiler_params=pltpu.CompilerParams(
            dimension_semantics=("parallel",),       # batch tiles are independent
            vmem_limit_bytes=32 * 1024 * 1024,       # explicit: safe on v5e/v6e/v7x
        ),
        cost_estimate=pl.CostEstimate(
            flops=flops, transcendentals=0, bytes_accessed=bytes_accessed),
    )(feature_bf16, w1_t, b1, w2_t_pad, b2_pad)

    # Slice the lane padding away and upcast logits to f32.
    return out_pad[:, :OUTPUT_DIM].astype(jnp.float32)


def init_params(key):
    """Deterministic parameter init mirroring the PyTorch module's __init__."""
    k1, k2 = jax.random.split(key)
    # fc1: weight [512, 2048] ~ N(0, 0.01), bias 0
    w1 = 0.01 * jax.random.normal(k1, (HIDDEN_DIM, INPUT_DIM), jnp.float32)
    b1 = jnp.zeros((1, HIDDEN_DIM), jnp.float32)
    # fc2: weight [3, 512] ~ N(0, 0.3), bias 0
    w2 = 0.3 * jax.random.normal(k2, (OUTPUT_DIM, HIDDEN_DIM), jnp.float32)
    b2 = jnp.zeros((1, OUTPUT_DIM), jnp.float32)

    # Pre-transpose for x @ W layout; pad fc2 output dim to OUT_PAD lanes.
    # Weights stored in bf16 (halves the dominant HBM transfer); biases f32.
    w1_t = w1.T.astype(jnp.bfloat16)                        # [2048, 512]
    w2_t_pad = (
        jnp.zeros((HIDDEN_DIM, OUT_PAD), jnp.float32)
        .at[:, :OUTPUT_DIM].set(w2.T)
        .astype(jnp.bfloat16)
    )                                                       # [512, 128]
    b2_pad = jnp.zeros((1, OUT_PAD), jnp.float32).at[:, :OUTPUT_DIM].set(b2)
    return w1_t, b1, w2_t_pad, b2_pad, (w1, b1, w2, b2)


if __name__ == "__main__":
    key = jax.random.PRNGKey(0)
    kx, kp = jax.random.split(key)

    B = 8  # batch size (sublane-aligned)
    feature_f32 = jax.random.normal(kx, (B, INPUT_DIM), jnp.float32)
    # Producer-side bf16 ingest (in a real model the upstream op emits bf16).
    feature = feature_f32.astype(jnp.bfloat16)

    w1_t, b1, w2_t_pad, b2_pad, (w1, b1_raw, w2, b2_raw) = init_params(kp)

    out = discriminator_forward(feature, w1_t, b1, w2_t_pad, b2_pad)
    out = jax.block_until_ready(out)
    assert out.shape == (B, OUTPUT_DIM)
    assert out.dtype == jnp.float32

    # Tight check vs. a pure-JAX reference using the same bf16-in / f32-acc /
    # bf16-out arithmetic as the kernel.
    h_bf = jnp.maximum(
        jnp.dot(feature, w1_t, preferred_element_type=jnp.float32) + b1_raw, 0.0)
    ref_bf = (jnp.dot(h_bf.astype(jnp.bfloat16), w2_t_pad,
                      preferred_element_type=jnp.float32) + b2_pad)
    ref_bf = ref_bf.astype(jnp.bfloat16)[:, :OUTPUT_DIM].astype(jnp.float32)
    assert jnp.allclose(out, ref_bf, atol=2e-2, rtol=2e-2), "mismatch vs bf16 reference"

    # Loose check vs. the full-precision PyTorch-equivalent reference
    # (GRL identity, dropout eval); bf16 storage changes numerics slightly.
    h_ref = jnp.maximum(feature_f32 @ w1.T + b1_raw, 0.0)
    ref = h_ref @ w2.T + b2_raw
    assert jnp.allclose(out, ref, atol=3e-1, rtol=1e-1), "mismatch vs f32 reference"

    print("KERNEL_OK")
</pallas_src>

<mosaic_0001>
module attributes {stable_mosaic.version = 11 : i64} {
  func.func @_discriminator_kernel(%arg0: i32, %arg1: memref<8x2048xbf16, #tpu.memory_space<vmem>>, %arg2: memref<2048x512xbf16, #tpu.memory_space<vmem>>, %arg3: memref<1x512xf32, #tpu.memory_space<vmem>>, %arg4: memref<512x128xbf16, #tpu.memory_space<vmem>>, %arg5: memref<1x128xf32, #tpu.memory_space<vmem>>, %arg6: memref<8x128xbf16, #tpu.memory_space<vmem>>) attributes {dimension_semantics = [#tpu.dimension_semantics<parallel>], iteration_bounds = array<i64: 1>, scalar_prefetch = 0 : i64, scratch_operands = 0 : i64, tpu.core_type = #tpu.core_type<tc>, window_params = [{transform_indices = @transform_0, window_bounds = array<i64: 8, 2048>}, {pipeline_mode = #tpu.pipeline_mode<synchronous>, transform_indices = @transform_1, window_bounds = array<i64: 2048, 512>}, {pipeline_mode = #tpu.pipeline_mode<synchronous>, transform_indices = @transform_2, window_bounds = array<i64: 1, 512>}, {pipeline_mode = #tpu.pipeline_mode<synchronous>, transform_indices = @transform_3, window_bounds = array<i64: 512, 128>}, {pipeline_mode = #tpu.pipeline_mode<synchronous>, transform_indices = @transform_4, window_bounds = array<i64: 1, 128>}, {transform_indices = @transform_5, window_bounds = array<i64: 8, 128>}]} {
    %c0 = arith.constant 0 : index
    %c0_0 = arith.constant 0 : index
    %0 = vector.load %arg1[%c0, %c0_0] : memref<8x2048xbf16, #tpu.memory_space<vmem>>, vector<8x2048xbf16>
    %c0_1 = arith.constant 0 : index
    %c0_2 = arith.constant 0 : index
    %1 = vector.load %arg2[%c0_1, %c0_2] : memref<2048x512xbf16, #tpu.memory_space<vmem>>, vector<2048x512xbf16>
    %cst = arith.constant dense<0.000000e+00> : vector<8x512xf32>
    %2 = tpu.matmul %0, %1, %cst {dimension_numbers = #tpu.dot_dimension_numbers<[1], [0], [0], [1], [0, 0, 1, 1], [], []>} : vector<8x2048xbf16>, vector<2048x512xbf16>, vector<8x512xf32> -> vector<8x512xf32>
    %c0_3 = arith.constant 0 : index
    %c0_4 = arith.constant 0 : index
    %3 = vector.load %arg3[%c0_3, %c0_4] : memref<1x512xf32, #tpu.memory_space<vmem>>, vector<1x512xf32>
    %4 = vector.broadcast %3 : vector<1x512xf32> to vector<8x512xf32>
    %5 = arith.addf %2, %4 : vector<8x512xf32>
    %cst_5 = arith.constant 0.000000e+00 : f32
    %6 = vector.broadcast %cst_5 : f32 to vector<8x512xf32>
    %7 = arith.maximumf %5, %6 : vector<8x512xf32>
    %8 = arith.truncf %7 : vector<8x512xf32> to vector<8x512xbf16>
    %c0_6 = arith.constant 0 : index
    %c0_7 = arith.constant 0 : index
    %9 = vector.load %arg4[%c0_6, %c0_7] : memref<512x128xbf16, #tpu.memory_space<vmem>>, vector<512x128xbf16>
    %cst_8 = arith.constant dense<0.000000e+00> : vector<8x128xf32>
    %10 = tpu.matmul %8, %9, %cst_8 {dimension_numbers = #tpu.dot_dimension_numbers<[1], [0], [0], [1], [0, 0, 1, 1], [], []>} : vector<8x512xbf16>, vector<512x128xbf16>, vector<8x128xf32> -> vector<8x128xf32>
    %c0_9 = arith.constant 0 : index
    %c0_10 = arith.constant 0 : index
    %11 = vector.load %arg5[%c0_9, %c0_10] : memref<1x128xf32, #tpu.memory_space<vmem>>, vector<1x128xf32>
    %12 = vector.broadcast %11 : vector<1x128xf32> to vector<8x128xf32>
    %13 = arith.addf %10, %12 : vector<8x128xf32>
    %14 = arith.truncf %13 : vector<8x128xf32> to vector<8x128xbf16>
    %c0_11 = arith.constant 0 : index
    %c0_12 = arith.constant 0 : index
    %15 = vector.load %arg6[%c0_11, %c0_12] : memref<8x128xbf16, #tpu.memory_space<vmem>>, vector<8x128xbf16>
    tpu.vector_store %arg6[%c0_11, %c0_12], %14 {strides = array<i32>} : memref<8x128xbf16, #tpu.memory_space<vmem>>, vector<8x128xbf16>,
    return
  }
  func.func @transform_0(%arg0: i32) -> (i32, i32) {
    %c0_i32 = arith.constant 0 : i32
    %c0_i32_0 = arith.constant 0 : i32
    return %arg0, %c0_i32 : i32, i32
  }
  func.func @transform_1(%arg0: i32) -> (i32, i32) {
    %c0_i32 = arith.constant 0 : i32
    %c0_i32_0 = arith.constant 0 : i32
    %c0_i32_1 = arith.constant 0 : i32
    return %c0_i32, %c0_i32_0 : i32, i32
  }
  func.func @transform_2(%arg0: i32) -> (i32, i32) {
    %c0_i32 = arith.constant 0 : i32
    %c0_i32_0 = arith.constant 0 : i32
    %c0_i32_1 = arith.constant 0 : i32
    return %c0_i32, %c0_i32_0 : i32, i32
  }
  func.func @transform_3(%arg0: i32) -> (i32, i32) {
    %c0_i32 = arith.constant 0 : i32
    %c0_i32_0 = arith.constant 0 : i32
    %c0_i32_1 = arith.constant 0 : i32
    return %c0_i32, %c0_i32_0 : i32, i32
  }
  func.func @transform_4(%arg0: i32) -> (i32, i32) {
    %c0_i32 = arith.constant 0 : i32
    %c0_i32_0 = arith.constant 0 : i32
    %c0_i32_1 = arith.constant 0 : i32
    return %c0_i32, %c0_i32_0 : i32, i32
  }
  func.func @transform_5(%arg0: i32) -> (i32, i32) {
    %c0_i32 = arith.constant 0 : i32
    %c0_i32_0 = arith.constant 0 : i32
    return %arg0, %c0_i32 : i32, i32
  }
}

</mosaic_0001>

<bundles_post_ra>
// kernel: discriminator_forward.1
= control target key start
LH: loop header
LB: loop body
LE: loop exit
PB: predicated region body
PF: predicated region fallthrough
CT: control target
= control target key end

     0   :  { %10 = vsyncpa [#allocation3], 0  ;;  %s5984_s0 = inlined_call_operand.hbm [shape: bf16[8,2048], index: 0, kind: input, shape index: {}]   ;;  %s5985_s1 = inlined_call_operand.hbm [shape: bf16[2048,512], index: 1, kind: input, shape index: {}]   ;;  %s5986_s2 = inlined_call_operand.hbm [shape: f32[1,512], index: 2, kind: input, shape index: {}]   ;;  %s5987_s3 = inlined_call_operand.hbm [shape: bf16[512,128], index: 3, kind: input, shape index: {}]   ;;  %s5988_s4 = inlined_call_operand.hbm [shape: f32[1,128], index: 4, kind: input, shape index: {}]   ;;  %s5989_s5 = inlined_call_operand.vmem [shape: bf16[8,128], index: 5, kind: output, shape index: {}]  }
   0x1   :  { %11 = vsyncpa [#allocation5], 0 }
   0x2   :  { %12 = vsyncpa [#allocation8], 0  ;;  %s5794_s18 = smov [#allocation4]  }
   0x3   :  { %s28_s19 = sshll.u32 %s5794_s18, 4  ;;  %s29_s19 = int_to_ptr.vmem [resolvable:$true] %s28_s19 }
   0x4   :  { %s5696_s20 = scalar_lea.vmem %s29_s19, 65536  ;;  %p5701_p1 = scmp.lt.s32.totalorder %s29_s19, %s29_s19 }
   0x5   :  { %p5697_p0 = scmp.ne.s32.totalorder %s29_s19, %s5696_s20  ;;  %p5702_p2 = scmp.lt.s32.totalorder %s5696_s20, %s5696_s20 }
   0x7   :  { %p5703_p3 = por %p5702_p2, %p5701_p1 }
   0x9   :  { %p5704_p4 = pnand %p5703_p3, %p5697_p0 }
   0xb   :  { %5707 = shalt.err (!%p5704_p4)
}
   0xc   :  { %s5795_s21 = smov 256   ;;  %s5796_s22 = smov 16  }
   0xd   :  { %34 = dma.hbm_to_vmem [thread:$0]  %s5985_s1, 65536, %s29_s19, [#allocation5], %s5795_s21, %s5795_s21, %s5796_s22  }
   0xe   :  { %s5797_s25 = smov [#allocation7]  }
   0xf   :  { %s50_s26 = sshll.u32 %s5797_s25, 4  ;;  %s51_s26 = int_to_ptr.vmem [resolvable:$true] %s50_s26 }
  0x10   :  { %s5716_s27 = scalar_lea.vmem %s51_s26, 4096  ;;  %p5721_p6 = scmp.lt.s32.totalorder %s51_s26, %s51_s26 }
  0x11   :  { %p5717_p5 = scmp.ne.s32.totalorder %s51_s26, %s5716_s27  ;;  %p5722_p7 = scmp.lt.s32.totalorder %s5716_s27, %s5716_s27 }
  0x13   :  { %p5723_p8 = por %p5722_p7, %p5721_p6 }
  0x15   :  { %p5724_p9 = pnand %p5723_p8, %p5717_p5 }
  0x17   :  { %5727 = shalt.err (!%p5724_p9)
}
  0x18   :  { %s5798_s28 = smov 64   ;;  %s5799_s29 = smov 4  }
  0x19   :  { %56 = dma.hbm_to_vmem [thread:$0]  %s5987_s3, 4096, %s51_s26, [#allocation8], %s5798_s28, %s5798_s28, %s5799_s29  }
  0x1a   :  { %s5800_s7 = smov [#allocation2]   ;;  %s5801_s9 = smov [#allocation6]  }
  0x1b   :  { %s19_s8 = sshll.u32 %s5800_s7, 4  ;;  %s41_s1 = sshll.u32 %s5801_s9, 4  ;;  %s20_s8 = int_to_ptr.vmem [resolvable:$true] %s19_s8  ;;  %s42_s1 = int_to_ptr.vmem [resolvable:$true] %s41_s1 }
  0x1c   :  { %s5736_s10 = scalar_lea.vmem %s20_s8, 1024  ;;  %p5741_p11 = scmp.lt.s32.totalorder %s20_s8, %s20_s8 }
  0x1d   :  { %p5737_p10 = scmp.ne.s32.totalorder %s20_s8, %s5736_s10  ;;  %p5742_p12 = scmp.lt.s32.totalorder %s5736_s10, %s5736_s10 }
  0x1f   :  { %p5743_p13 = por %p5742_p12, %p5741_p11 }
  0x21   :  { %p5744_p0 = pnand %p5743_p13, %p5737_p10 }
  0x23   :  { %5747 = shalt.err (!%p5744_p0)
}
  0x24   :  { %22 = dma.hbm_to_vmem [thread:$0]  %s5984_s0, 1024, %s20_s8, [#allocation3]  }
  0x25   :  { %s5756_s13 = scalar_lea.vmem %s42_s1, 64  ;;  %p5761_p2 = scmp.lt.s32.totalorder %s42_s1, %s42_s1 }
  0x26   :  { %p5757_p1 = scmp.ne.s32.totalorder %s42_s1, %s5756_s13  ;;  %p5762_p3 = scmp.lt.s32.totalorder %s5756_s13, %s5756_s13 }
  0x28   :  { %p5763_p4 = por %p5762_p3, %p5761_p2 }
  0x2a   :  { %p5764_p5 = pnand %p5763_p4, %p5757_p1 }
  0x2c   :  { %5767 = shalt.err (!%p5764_p5)
}
  0x2d   :  { %44 = dma.hbm_to_vmem [thread:$0]  %s5986_s2, 64, %s42_s1, [#allocation5]  }
  0x2e   :  { %s5802_s15 = smov [#allocation9]  }
  0x2f   :  { %s63_s16 = sshll.u32 %s5802_s15, 4  ;;  %s64_s16 = int_to_ptr.vmem [resolvable:$true] %s63_s16 }
  0x30   :  { %s5776_s17 = scalar_lea.vmem %s64_s16, 16  ;;  %s5780_s18 = scalar_lea.vmem %s64_s16, 32 }
  0x31   :  { %p5777_p6 = scmp.ne.s32.totalorder %s64_s16, %s5776_s17  ;;  %p5781_p7 = scmp.lt.s32.totalorder %s64_s16, %s64_s16 }
  0x32   :  { %p5782_p8 = scmp.lt.s32.totalorder %s5780_s18, %s5776_s17 }
  0x34   :  { %p5783_p9 = por %p5782_p8, %p5781_p7 }
  0x36   :  { %p5784_p10 = pnand %p5783_p9, %p5777_p6 }
  0x38   :  { %5787 = shalt.err (!%p5784_p10)
}
  0x39   :  { %66 = dma.hbm_to_vmem [thread:$0]  %s5988_s4, 16, %s64_s16, [#allocation8]  }
  0x3a   :  { %5788 = dma.done.wait [#allocation3], 1024  }
  0x3b   :  { %5789 = vsyncadd [#allocation3], 4294966272 }
  0x3c   :  { %5790 = dma.done.wait [#allocation5], 65600  }
  0x3d   :  { %5791 = vsyncadd [#allocation5], 4294901696 }
  0x3e   :  { %5792 = dma.done.wait [#allocation8], 4112  }
  0x3f   :  { %5793 = vsyncadd [#allocation8], 4294963184  ;;  %v4871_v0 = vld [vmem:[#allocation4 + $0xe4] ss:$16 sps:$4 sm:$0xff]   ;;  %v4875_v2 = vld [vmem:[#allocation4 + $0xe0] ss:$16 sps:$4 sm:$0xff]  }
  0x40   :  { %v4873_v1 = vld [vmem:[#allocation4 + $0x2e4] ss:$16 sps:$4 sm:$0xff]   ;;  %3241 = vmatprep.subr.bf16.mxu0 %v4871_v0  ;;  %v4876_v3 = vld [vmem:[#allocation4 + $0x2e0] ss:$16 sps:$4 sm:$0xff]   ;;  %v84_v48 = vld [vmem:[#allocation2 + $0x8] sm:$0xff] }
  0x41   :  { %3282 = vmatprep.subr.bf16.mxu1 %v4873_v1  ;;  %v4877_v4 = vld [vmem:[#allocation4 + $0xc4] ss:$16 sps:$4 sm:$0xff]   ;;  %3242 = vmatpush1.bf16.msra.mxu0 %v4875_v2  ;;  %v4881_v6 = vld [vmem:[#allocation4 + $0xc0] ss:$16 sps:$4 sm:$0xff]   ;;  %v5850_v51 = vcombine.high %v84_v48, %v84_v48 }
  0x42   :  { %3283 = vmatpush1.bf16.msra.mxu1 %v4876_v3  ;;  %v4879_v5 = vld [vmem:[#allocation4 + $0x2c4] ss:$16 sps:$4 sm:$0xff]   ;;  %3243 = vmatprep.subr.bf16.mxu0 %v4877_v4  ;;  %v4882_v7 = vld [vmem:[#allocation4 + $0x2c0] ss:$16 sps:$4 sm:$0xff]  }
  0x43   :  { %3284 = vmatprep.subr.bf16.mxu1 %v4879_v5  ;;  %v4883_v8 = vld [vmem:[#allocation4 + $0xa4] ss:$16 sps:$4 sm:$0xff]   ;;  %v4887_v10 = vld [vmem:[#allocation4 + $0xa0] ss:$16 sps:$4 sm:$0xff]   ;;  %3314 = vmatprep.mubr.bf16.mxu1 %v5850_v51 }
  0x44   :  { %v4885_v9 = vld [vmem:[#allocation4 + $0x2a4] ss:$16 sps:$4 sm:$0xff]   ;;  %v4888_v11 = vld [vmem:[#allocation4 + $0x2a0] ss:$16 sps:$4 sm:$0xff]  }
  0x45   :  { %3244 = vmatpush1.bf16.msra.mxu0 %v4881_v6  ;;  %v4889_v12 = vld [vmem:[#allocation4 + $0x84] ss:$16 sps:$4 sm:$0xff]   ;;  %v4893_v14 = vld [vmem:[#allocation4 + $0x80] ss:$16 sps:$4 sm:$0xff]  }
  0x46   :  { %3285 = vmatpush1.bf16.msra.mxu1 %v4882_v7  ;;  %3245 = vmatprep.subr.bf16.mxu0 %v4883_v8  ;;  %v4891_v13 = vld [vmem:[#allocation4 + $0x284] ss:$16 sps:$4 sm:$0xff]   ;;  %v4894_v15 = vld [vmem:[#allocation4 + $0x280] ss:$16 sps:$4 sm:$0xff]   ;;  %v5856_v7 = vcombine.low %v84_v48, %v84_v48 }
  0x47   :  { %3286 = vmatprep.subr.bf16.mxu1 %v4885_v9  ;;  %v4895_v16 = vld [vmem:[#allocation4 + $0x64] ss:$16 sps:$4 sm:$0xff]   ;;  %v4899_v18 = vld [vmem:[#allocation4 + $0x60] ss:$16 sps:$4 sm:$0xff]  }
  0x48   :  { %v4897_v17 = vld [vmem:[#allocation4 + $0x264] ss:$16 sps:$4 sm:$0xff]   ;;  %v4900_v19 = vld [vmem:[#allocation4 + $0x260] ss:$16 sps:$4 sm:$0xff]  }
  0x49   :  { %3246 = vmatpush1.bf16.msra.mxu0 %v4887_v10  ;;  %v4901_v20 = vld [vmem:[#allocation4 + $0x44] ss:$16 sps:$4 sm:$0xff]   ;;  %v4905_v22 = vld [vmem:[#allocation4 + $0x40] ss:$16 sps:$4 sm:$0xff]  }
  0x4a   :  { %3287 = vmatpush1.bf16.msra.mxu1 %v4888_v11  ;;  %3247 = vmatprep.subr.bf16.mxu0 %v4889_v12  ;;  %v4903_v21 = vld [vmem:[#allocation4 + $0x244] ss:$16 sps:$4 sm:$0xff]   ;;  %v4906_v23 = vld [vmem:[#allocation4 + $0x240] ss:$16 sps:$4 sm:$0xff]  }
  0x4b   :  { %3288 = vmatprep.subr.bf16.mxu1 %v4891_v13  ;;  %v4907_v24 = vld [vmem:[#allocation4 + $0x24] ss:$16 sps:$4 sm:$0xff]   ;;  %v4911_v26 = vld [vmem:[#allocation4 + $0x20] ss:$16 sps:$4 sm:$0xff]  }
  0x4c   :  { %v4909_v25 = vld [vmem:[#allocation4 + $0x224] ss:$16 sps:$4 sm:$0xff]   ;;  %v4912_v27 = vld [vmem:[#allocation4 + $0x220] ss:$16 sps:$4 sm:$0xff]  }
  0x4d   :  { %3248 = vmatpush1.bf16.msra.mxu0 %v4893_v14  ;;  %v4913_v28 = vld [vmem:[#allocation4 + $0x4] ss:$16 sps:$4 sm:$0xff]   ;;  %v4917_v30 = vld [vmem:[#allocation4] ss:$16 sps:$4 sm:$0xff]  }
  0x4e   :  { %3289 = vmatpush1.bf16.msra.mxu1 %v4894_v15  ;;  %3249 = vmatprep.subr.bf16.mxu0 %v4895_v16  ;;  %v4915_v29 = vld [vmem:[#allocation4 + $0x204] ss:$16 sps:$4 sm:$0xff]   ;;  %v4918_v31 = vld [vmem:[#allocation4 + $0x200] ss:$16 sps:$4 sm:$0xff]  }
  0x4f   :  { %3290 = vmatprep.subr.bf16.mxu1 %v4897_v17  ;;  %v4919_v32 = vld [vmem:[#allocation4 + $0x1e4] ss:$16 sps:$4 sm:$0xff]   ;;  %v4923_v34 = vld [vmem:[#allocation4 + $0x1e0] ss:$16 sps:$4 sm:$0xff]  }
  0x50   :  { %v4921_v33 = vld [vmem:[#allocation4 + $0x3e4] ss:$16 sps:$4 sm:$0xff]   ;;  %v4924_v35 = vld [vmem:[#allocation4 + $0x3e0] ss:$16 sps:$4 sm:$0xff]  }
  0x51   :  { %3250 = vmatpush1.bf16.msra.mxu0 %v4899_v18  ;;  %v4925_v36 = vld [vmem:[#allocation4 + $0x1c4] ss:$16 sps:$4 sm:$0xff]   ;;  %v4929_v38 = vld [vmem:[#allocation4 + $0x1c0] ss:$16 sps:$4 sm:$0xff]  }
  0x52   :  { %3291 = vmatpush1.bf16.msra.mxu1 %v4900_v19  ;;  %3251 = vmatprep.subr.bf16.mxu0 %v4901_v20  ;;  %v4927_v37 = vld [vmem:[#allocation4 + $0x3c4] ss:$16 sps:$4 sm:$0xff]   ;;  %v4930_v39 = vld [vmem:[#allocation4 + $0x3c0] ss:$16 sps:$4 sm:$0xff]  }
  0x53   :  { %3292 = vmatprep.subr.bf16.mxu1 %v4903_v21  ;;  %v4931_v40 = vld [vmem:[#allocation4 + $0x1a4] ss:$16 sps:$4 sm:$0xff]   ;;  %v4935_v42 = vld [vmem:[#allocation4 + $0x1a0] ss:$16 sps:$4 sm:$0xff]  }
  0x54   :  { %v4933_v41 = vld [vmem:[#allocation4 + $0x3a4] ss:$16 sps:$4 sm:$0xff]   ;;  %v4936_v43 = vld [vmem:[#allocation4 + $0x3a0] ss:$16 sps:$4 sm:$0xff]  }
  0x55   :  { %3252 = vmatpush1.bf16.msra.mxu0 %v4905_v22  ;;  %v4937_v44 = vld [vmem:[#allocation4 + $0x184] ss:$16 sps:$4 sm:$0xff]   ;;  %v4941_v49 = vld [vmem:[#allocation4 + $0x180] ss:$16 sps:$4 sm:$0xff]  }
  0x56   :  { %3293 = vmatpush1.bf16.msra.mxu1 %v4906_v23  ;;  %3253 = vmatprep.subr.bf16.mxu0 %v4907_v24  ;;  %v4939_v45 = vld [vmem:[#allocation4 + $0x384] ss:$16 sps:$4 sm:$0xff]   ;;  %v4942_v50 = vld [vmem:[#allocation4 + $0x380] ss:$16 sps:$4 sm:$0xff]  }
  0x57   :  { %3294 = vmatprep.subr.bf16.mxu1 %v4909_v25  ;;  %v83_v46 = vld [vmem:[#allocation2] sm:$0xff] }
  0x58   :  { %v5848_v47 = vcombine.high %v83_v46, %v83_v46  ;;  %v4943_v52 = vld [vmem:[#allocation4 + $0x164] ss:$16 sps:$4 sm:$0xff]   ;;  %v4947_v54 = vld [vmem:[#allocation4 + $0x160] ss:$16 sps:$4 sm:$0xff]   ;;  %v5854_v6 = vcombine.low %v83_v46, %v83_v46 }
  0x59   :  { %3254 = vmatpush1.bf16.msra.mxu0 %v4911_v26  ;;  %v4945_v53 = vld [vmem:[#allocation4 + $0x364] ss:$16 sps:$4 sm:$0xff]   ;;  %v4948_v55 = vld [vmem:[#allocation4 + $0x360] ss:$16 sps:$4 sm:$0xff]  }
  0x5a   :  { %3295 = vmatpush1.bf16.msra.mxu1 %v4912_v27  ;;  %3255 = vmatprep.subr.bf16.mxu0 %v4913_v28  ;;  %v4949_v56 = vld [vmem:[#allocation4 + $0x144] ss:$16 sps:$4 sm:$0xff]   ;;  %v4953_v58 = vld [vmem:[#allocation4 + $0x140] ss:$16 sps:$4 sm:$0xff]  }
  0x5b   :  { %3296 = vmatprep.subr.bf16.mxu1 %v4915_v29  ;;  %3273 = vmatprep.mubr.bf16.mxu0 %v5848_v47  ;;  %v4951_v57 = vld [vmem:[#allocation4 + $0x344] ss:$16 sps:$4 sm:$0xff]   ;;  %v4954_v59 = vld [vmem:[#allocation4 + $0x340] ss:$16 sps:$4 sm:$0xff]  }
  0x5c   :  { %v4955_v60 = vld [vmem:[#allocation4 + $0x124] ss:$16 sps:$4 sm:$0xff]   ;;  %v4959_v62 = vld [vmem:[#allocation4 + $0x120] ss:$16 sps:$4 sm:$0xff]  }
  0x5d   :  { %3256 = vmatpush1.bf16.msra.mxu0 %v4917_v30  ;;  %v4957_v61 = vld [vmem:[#allocation4 + $0x324] ss:$16 sps:$4 sm:$0xff]   ;;  %v4960_v63 = vld [vmem:[#allocation4 + $0x320] ss:$16 sps:$4 sm:$0xff]  }
  0x5e   :  { %3297 = vmatpush1.bf16.msra.mxu1 %v4918_v31  ;;  %3257 = vmatprep.subr.bf16.mxu0 %v4919_v32  ;;  %v4961_v0 = vld [vmem:[#allocation4 + $0x104] ss:$16 sps:$4 sm:$0xff]   ;;  %v4965_v2 = vld [vmem:[#allocation4 + $0x100] ss:$16 sps:$4 sm:$0xff]  }
  0x5f   :  { %3298 = vmatprep.subr.bf16.mxu1 %v4921_v33  ;;  %v4963_v1 = vld [vmem:[#allocation4 + $0x304] ss:$16 sps:$4 sm:$0xff]   ;;  %v4966_v3 = vld [vmem:[#allocation4 + $0x300] ss:$16 sps:$4 sm:$0xff]   ;;  %v5862_v33 = vld [vmem:[#allocation2 + $0x18] sm:$0xff] }
  0x60   :  { %v4973_v4 = vld [vmem:[#allocation4 + $0x4e4] ss:$16 sps:$4 sm:$0xff]   ;;  %v4971_v8 = vld [vmem:[#allocation4 + $0x4e0] ss:$16 sps:$4 sm:$0xff]  }
  0x61   :  { %3258 = vmatpush2.bf16.msra.mxu0 %v4923_v34  ;;  %v4976_v5 = vld [vmem:[#allocation4 + $0x6e4] ss:$16 sps:$4 sm:$0xff]   ;;  %v4974_v9 = vld [vmem:[#allocation4 + $0x6e0] ss:$16 sps:$4 sm:$0xff]  }
  0x62   :  { %3299 = vmatpush2.bf16.msra.mxu1 %v4924_v35  ;;  %3259 = vmatprep.subr.bf16.mxu0 %v4925_v36  ;;  %v4979_v10 = vld [vmem:[#allocation4 + $0x4c4] ss:$16 sps:$4 sm:$0xff]   ;;  %v4977_v12 = vld [vmem:[#allocation4 + $0x4c0] ss:$16 sps:$4 sm:$0xff]  }
  0x63   :  { %3300 = vmatprep.subr.bf16.mxu1 %v4927_v37  ;;  %v4982_v11 = vld [vmem:[#allocation4 + $0x6c4] ss:$16 sps:$4 sm:$0xff]   ;;  %v4980_v13 = vld [vmem:[#allocation4 + $0x6c0] ss:$16 sps:$4 sm:$0xff]   ;;  %v5870_v37 = vcombine.high %v5862_v33, %v5862_v33 }
  0x64   :  { %v4985_v14 = vld [vmem:[#allocation4 + $0x4a4] ss:$16 sps:$4 sm:$0xff]   ;;  %v4983_v16 = vld [vmem:[#allocation4 + $0x4a0] ss:$16 sps:$4 sm:$0xff]  }
  0x65   :  { %3260 = vmatpush2.bf16.msra.mxu0 %v4929_v38  ;;  %v4988_v15 = vld [vmem:[#allocation4 + $0x6a4] ss:$16 sps:$4 sm:$0xff]   ;;  %v4986_v17 = vld [vmem:[#allocation4 + $0x6a0] ss:$16 sps:$4 sm:$0xff]  }
  0x66   :  { %3301 = vmatpush2.bf16.msra.mxu1 %v4930_v39  ;;  %3261 = vmatprep.subr.bf16.mxu0 %v4931_v40  ;;  %v4991_v18 = vld [vmem:[#allocation4 + $0x484] ss:$16 sps:$4 sm:$0xff]   ;;  %v4989_v20 = vld [vmem:[#allocation4 + $0x480] ss:$16 sps:$4 sm:$0xff]  }
  0x67   :  { %3302 = vmatprep.subr.bf16.mxu1 %v4933_v41  ;;  %v4994_v19 = vld [vmem:[#allocation4 + $0x684] ss:$16 sps:$4 sm:$0xff]   ;;  %v4992_v21 = vld [vmem:[#allocation4 + $0x680] ss:$16 sps:$4 sm:$0xff]  }
  0x68   :  { %v4997_v22 = vld [vmem:[#allocation4 + $0x464] ss:$16 sps:$4 sm:$0xff]   ;;  %v4995_v24 = vld [vmem:[#allocation4 + $0x460] ss:$16 sps:$4 sm:$0xff]  }
  0x69   :  { %3262 = vmatpush2.bf16.msra.mxu0 %v4935_v42  ;;  %v5000_v23 = vld [vmem:[#allocation4 + $0x664] ss:$16 sps:$4 sm:$0xff]   ;;  %v4998_v25 = vld [vmem:[#allocation4 + $0x660] ss:$16 sps:$4 sm:$0xff]  }
  0x6a   :  { %3303 = vmatpush2.bf16.msra.mxu1 %v4936_v43  ;;  %3263 = vmatprep.subr.bf16.mxu0 %v4937_v44  ;;  %v5003_v26 = vld [vmem:[#allocation4 + $0x444] ss:$16 sps:$4 sm:$0xff]   ;;  %v5001_v28 = vld [vmem:[#allocation4 + $0x440] ss:$16 sps:$4 sm:$0xff]  }
  0x6b   :  { %3304 = vmatprep.subr.bf16.mxu1 %v4939_v45  ;;  %v5006_v27 = vld [vmem:[#allocation4 + $0x644] ss:$16 sps:$4 sm:$0xff]   ;;  %v5004_v29 = vld [vmem:[#allocation4 + $0x640] ss:$16 sps:$4 sm:$0xff]  }
  0x6c   :  { %v5009_v30 = vld [vmem:[#allocation4 + $0x424] ss:$16 sps:$4 sm:$0xff]   ;;  %v5007_v34 = vld [vmem:[#allocation4 + $0x420] ss:$16 sps:$4 sm:$0xff]  }
  0x6d   :  { %3264 = vmatpush2.bf16.msra.mxu0 %v4941_v49  ;;  %v5012_v31 = vld [vmem:[#allocation4 + $0x624] ss:$16 sps:$4 sm:$0xff]   ;;  %v5010_v35 = vld [vmem:[#allocation4 + $0x620] ss:$16 sps:$4 sm:$0xff]  }
  0x6e   :  { %3305 = vmatpush2.bf16.msra.mxu1 %v4942_v50  ;;  %3265 = vmatprep.subr.bf16.mxu0 %v4943_v52  ;;  %v5860_v32 = vld [vmem:[#allocation2 + $0x10] sm:$0xff] }
  0x6f   :  { %3306 = vmatprep.subr.bf16.mxu1 %v4945_v53  ;;  %v5866_v36 = vcombine.high %v5860_v32, %v5860_v32  ;;  %v5015_v38 = vld [vmem:[#allocation4 + $0x404] ss:$16 sps:$4 sm:$0xff]   ;;  %v5013_v40 = vld [vmem:[#allocation4 + $0x400] ss:$16 sps:$4 sm:$0xff]  }
  0x70   :  { %v5018_v39 = vld [vmem:[#allocation4 + $0x604] ss:$16 sps:$4 sm:$0xff]   ;;  %v5016_v41 = vld [vmem:[#allocation4 + $0x600] ss:$16 sps:$4 sm:$0xff]  }
  0x71   :  { %3266 = vmatpush2.bf16.msra.mxu0 %v4947_v54  ;;  %v5021_v42 = vld [vmem:[#allocation4 + $0x5e4] ss:$16 sps:$4 sm:$0xff]   ;;  %v5019_v44 = vld [vmem:[#allocation4 + $0x5e0] ss:$16 sps:$4 sm:$0xff]  }
  0x72   :  { %3307 = vmatpush2.bf16.msra.mxu1 %v4948_v55  ;;  %3267 = vmatprep.subr.bf16.mxu0 %v4949_v56  ;;  %v5024_v43 = vld [vmem:[#allocation4 + $0x7e4] ss:$16 sps:$4 sm:$0xff]   ;;  %v5022_v45 = vld [vmem:[#allocation4 + $0x7e0] ss:$16 sps:$4 sm:$0xff]  }
  0x73   :  { %3308 = vmatprep.subr.bf16.mxu1 %v4951_v57  ;;  %v5027_v46 = vld [vmem:[#allocation4 + $0x5c4] ss:$16 sps:$4 sm:$0xff]   ;;  %v5025_v49 = vld [vmem:[#allocation4 + $0x5c0] ss:$16 sps:$4 sm:$0xff]  }
  0x74   :  { %v5030_v48 = vld [vmem:[#allocation4 + $0x7c4] ss:$16 sps:$4 sm:$0xff]   ;;  %v5028_v50 = vld [vmem:[#allocation4 + $0x7c0] ss:$16 sps:$4 sm:$0xff]  }
  0x75   :  { %3268 = vmatpush2.bf16.msra.mxu0 %v4953_v58  ;;  %v5033_v52 = vld [vmem:[#allocation4 + $0x5a4] ss:$16 sps:$4 sm:$0xff]   ;;  %v5031_v54 = vld [vmem:[#allocation4 + $0x5a0] ss:$16 sps:$4 sm:$0xff]  }
  0x76   :  { %3309 = vmatpush2.bf16.msra.mxu1 %v4954_v59  ;;  %3269 = vmatprep.subr.bf16.mxu0 %v4955_v60  ;;  %v5036_v53 = vld [vmem:[#allocation4 + $0x7a4] ss:$16 sps:$4 sm:$0xff]   ;;  %v5034_v55 = vld [vmem:[#allocation4 + $0x7a0] ss:$16 sps:$4 sm:$0xff]  }
  0x77   :  { %3310 = vmatprep.subr.bf16.mxu1 %v4957_v61  ;;  %v5039_v56 = vld [vmem:[#allocation4 + $0x584] ss:$16 sps:$4 sm:$0xff]   ;;  %v5037_v58 = vld [vmem:[#allocation4 + $0x580] ss:$16 sps:$4 sm:$0xff]  }
  0x78   :  { %v5042_v57 = vld [vmem:[#allocation4 + $0x784] ss:$16 sps:$4 sm:$0xff]   ;;  %v5040_v59 = vld [vmem:[#allocation4 + $0x780] ss:$16 sps:$4 sm:$0xff]  }
  0x79   :  { %3270 = vmatpush2.bf16.msra.mxu0 %v4959_v62  ;;  %v5045_v60 = vld [vmem:[#allocation4 + $0x564] ss:$16 sps:$4 sm:$0xff]   ;;  %v5043_v62 = vld [vmem:[#allocation4 + $0x560] ss:$16 sps:$4 sm:$0xff]  }
  0x7a   :  { %3311 = vmatpush2.bf16.msra.mxu1 %v4960_v63  ;;  %3271 = vmatprep.subr.bf16.mxu0 %v4961_v0  ;;  %v5048_v61 = vld [vmem:[#allocation4 + $0x764] ss:$16 sps:$4 sm:$0xff]   ;;  %v5046_v63 = vld [vmem:[#allocation4 + $0x760] ss:$16 sps:$4 sm:$0xff]  }
  0x7b   :  { %3312 = vmatprep.subr.bf16.mxu1 %v4963_v1  ;;  %v5051_v0 = vld [vmem:[#allocation4 + $0x544] ss:$16 sps:$4 sm:$0xff]  }
  0x7c   :  { %v5054_v1 = vld [vmem:[#allocation4 + $0x744] ss:$16 sps:$4 sm:$0xff]  }
  0x7d   :  { %3272 = vmatpush2.bf16.msra.mxu0 %v4965_v2  ;;  %v5049_v2 = vld [vmem:[#allocation4 + $0x540] ss:$16 sps:$4 sm:$0xff]  }
  0x7e   :  { %3313 = vmatpush2.bf16.msra.mxu1 %v4966_v3  ;;  %3323 = vmatprep.subr.bf16.mxu0 %v4973_v4  ;;  %v5052_v3 = vld [vmem:[#allocation4 + $0x740] ss:$16 sps:$4 sm:$0xff]   ;;  %v5057_v4 = vld [vmem:[#allocation4 + $0x524] ss:$16 sps:$4 sm:$0xff]  }
  0x7f   :  { %3364 = vmatprep.subr.bf16.mxu1 %v4976_v5  ;;  %v5060_v5 = vld [vmem:[#allocation4 + $0x724] ss:$16 sps:$4 sm:$0xff]  }
  0x80   :  { %3274 = vmatmul.mubr.bf16.vlgmr.msra.gmra.mxu0 %v5854_v6 }
  0x81   :  { %3315 = vmatmul.mubr.bf16.vlgmr.msra.gmra.mxu1 %v5856_v7  ;;  %3324 = vmatpush1.bf16.msra.mxu0 %v4971_v8  ;;  %v5055_v8 = vld [vmem:[#allocation4 + $0x520] ss:$16 sps:$4 sm:$0xff]  }
  0x82   :  { %3365 = vmatpush1.bf16.msra.mxu1 %v4974_v9  ;;  %3325 = vmatprep.subr.bf16.mxu0 %v4979_v10  ;;  %v5058_v9 = vld [vmem:[#allocation4 + $0x720] ss:$16 sps:$4 sm:$0xff]   ;;  %v5063_v10 = vld [vmem:[#allocation4 + $0x504] ss:$16 sps:$4 sm:$0xff]  }
  0x83   :  { %3366 = vmatprep.subr.bf16.mxu1 %v4982_v11  ;;  %3355 = vmatprep.mubr.bf16.mxu0 %v5866_v36  ;;  %v5066_v11 = vld [vmem:[#allocation4 + $0x704] ss:$16 sps:$4 sm:$0xff]  }
  0x84   :  { %3396 = vmatprep.mubr.bf16.mxu1 %v5870_v37 }
  0x85   :  { %3326 = vmatpush1.bf16.msra.mxu0 %v4977_v12  ;;  %v5061_v12 = vld [vmem:[#allocation4 + $0x500] ss:$16 sps:$4 sm:$0xff]  }
  0x86   :  { %3367 = vmatpush1.bf16.msra.mxu1 %v4980_v13  ;;  %3327 = vmatprep.subr.bf16.mxu0 %v4985_v14  ;;  %v5064_v13 = vld [vmem:[#allocation4 + $0x700] ss:$16 sps:$4 sm:$0xff]   ;;  %v5073_v14 = vld [vmem:[#allocation4 + $0x8e4] ss:$16 sps:$4 sm:$0xff]  }
  0x87   :  { %3368 = vmatprep.subr.bf16.mxu1 %v4988_v15  ;;  %v5076_v15 = vld [vmem:[#allocation4 + $0xae4] ss:$16 sps:$4 sm:$0xff]  }
  0x89   :  { %3328 = vmatpush1.bf16.msra.mxu0 %v4983_v16  ;;  %v5876_v16 = vcombine.low %v5860_v32, %v5860_v32  ;;  %v5091_v32 = vld [vmem:[#allocation4 + $0x884] ss:$16 sps:$4 sm:$0xff]  }
  0x8a   :  { %3369 = vmatpush1.bf16.msra.mxu1 %v4986_v17  ;;  %3329 = vmatprep.subr.bf16.mxu0 %v4991_v18  ;;  %v5880_v17 = vcombine.low %v5862_v33, %v5862_v33  ;;  %v5071_v18 = vld [vmem:[#allocation4 + $0x8e0] ss:$16 sps:$4 sm:$0xff]   ;;  %v5094_v33 = vld [vmem:[#allocation4 + $0xa84] ss:$16 sps:$4 sm:$0xff]  }
  0x8b   :  { %3370 = vmatprep.subr.bf16.mxu1 %v4994_v19  ;;  %v5074_v19 = vld [vmem:[#allocation4 + $0xae0] ss:$16 sps:$4 sm:$0xff]  }
  0x8d   :  { %3330 = vmatpush1.bf16.msra.mxu0 %v4989_v20  ;;  %v5079_v20 = vld [vmem:[#allocation4 + $0x8c4] ss:$16 sps:$4 sm:$0xff]  }
  0x8e   :  { %3371 = vmatpush1.bf16.msra.mxu1 %v4992_v21  ;;  %3331 = vmatprep.subr.bf16.mxu0 %v4997_v22  ;;  %v5082_v21 = vld [vmem:[#allocation4 + $0xac4] ss:$16 sps:$4 sm:$0xff]  }
  0x8f   :  { %3372 = vmatprep.subr.bf16.mxu1 %v5000_v23  ;;  %v5882_v22 = vld [vmem:[#allocation2 + $0x20] sm:$0xff]  ;;  %v5884_v23 = vld [vmem:[#allocation2 + $0x28] sm:$0xff] }
  0x91   :  { %3332 = vmatpush1.bf16.msra.mxu0 %v4995_v24  ;;  %v5888_v24 = vcombine.high %v5882_v22, %v5882_v22 }
  0x92   :  { %3373 = vmatpush1.bf16.msra.mxu1 %v4998_v25  ;;  %3333 = vmatprep.subr.bf16.mxu0 %v5003_v26  ;;  %v5892_v25 = vcombine.high %v5884_v23, %v5884_v23  ;;  %v5077_v26 = vld [vmem:[#allocation4 + $0x8c0] ss:$16 sps:$4 sm:$0xff]  }
  0x93   :  { %3374 = vmatprep.subr.bf16.mxu1 %v5006_v27  ;;  %v5080_v27 = vld [vmem:[#allocation4 + $0xac0] ss:$16 sps:$4 sm:$0xff]  }
  0x95   :  { %3334 = vmatpush1.bf16.msra.mxu0 %v5001_v28  ;;  %v5085_v28 = vld [vmem:[#allocation4 + $0x8a4] ss:$16 sps:$4 sm:$0xff]  }
  0x96   :  { %3375 = vmatpush1.bf16.msra.mxu1 %v5004_v29  ;;  %3335 = vmatprep.subr.bf16.mxu0 %v5009_v30  ;;  %v5088_v29 = vld [vmem:[#allocation4 + $0xaa4] ss:$16 sps:$4 sm:$0xff]   ;;  %v5083_v30 = vld [vmem:[#allocation4 + $0x8a0] ss:$16 sps:$4 sm:$0xff]  }
  0x97   :  { %3376 = vmatprep.subr.bf16.mxu1 %v5012_v31  ;;  %v5086_v31 = vld [vmem:[#allocation4 + $0xaa0] ss:$16 sps:$4 sm:$0xff]  }
  0x99   :  { %3336 = vmatpush1.bf16.msra.mxu0 %v5007_v34  ;;  %v5089_v34 = vld [vmem:[#allocation4 + $0x880] ss:$16 sps:$4 sm:$0xff]  }
  0x9a   :  { %3377 = vmatpush1.bf16.msra.mxu1 %v5010_v35  ;;  %3337 = vmatprep.subr.bf16.mxu0 %v5015_v38  ;;  %v5092_v35 = vld [vmem:[#allocation4 + $0xa80] ss:$16 sps:$4 sm:$0xff]   ;;  %v5097_v38 = vld [vmem:[#allocation4 + $0x864] ss:$16 sps:$4 sm:$0xff]  }
  0x9b   :  { %3378 = vmatprep.subr.bf16.mxu1 %v5018_v39  ;;  %v5100_v39 = vld [vmem:[#allocation4 + $0xa64] ss:$16 sps:$4 sm:$0xff]  }
  0x9d   :  { %3338 = vmatpush1.bf16.msra.mxu0 %v5013_v40  ;;  %v5095_v40 = vld [vmem:[#allocation4 + $0x860] ss:$16 sps:$4 sm:$0xff]  }
  0x9e   :  { %3379 = vmatpush1.bf16.msra.mxu1 %v5016_v41  ;;  %3339 = vmatprep.subr.bf16.mxu0 %v5021_v42  ;;  %v5098_v41 = vld [vmem:[#allocation4 + $0xa60] ss:$16 sps:$4 sm:$0xff]   ;;  %v5103_v42 = vld [vmem:[#allocation4 + $0x844] ss:$16 sps:$4 sm:$0xff]  }
  0x9f   :  { %3380 = vmatprep.subr.bf16.mxu1 %v5024_v43  ;;  %v5106_v43 = vld [vmem:[#allocation4 + $0xa44] ss:$16 sps:$4 sm:$0xff]  }
  0xa1   :  { %3340 = vmatpush2.bf16.msra.mxu0 %v5019_v44  ;;  %v5101_v44 = vld [vmem:[#allocation4 + $0x840] ss:$16 sps:$4 sm:$0xff]  }
  0xa2   :  { %3381 = vmatpush2.bf16.msra.mxu1 %v5022_v45  ;;  %3341 = vmatprep.subr.bf16.mxu0 %v5027_v46  ;;  %v5104_v45 = vld [vmem:[#allocation4 + $0xa40] ss:$16 sps:$4 sm:$0xff]   ;;  %v5109_v46 = vld [vmem:[#allocation4 + $0x824] ss:$16 sps:$4 sm:$0xff]  }
  0xa3   :  { %3382 = vmatprep.subr.bf16.mxu1 %v5030_v48  ;;  %v5112_v48 = vld [vmem:[#allocation4 + $0xa24] ss:$16 sps:$4 sm:$0xff]  }
  0xa5   :  { %3342 = vmatpush2.bf16.msra.mxu0 %v5025_v49  ;;  %v5107_v49 = vld [vmem:[#allocation4 + $0x820] ss:$16 sps:$4 sm:$0xff]  }
  0xa6   :  { %3383 = vmatpush2.bf16.msra.mxu1 %v5028_v50  ;;  %3343 = vmatprep.subr.bf16.mxu0 %v5033_v52  ;;  %v5110_v50 = vld [vmem:[#allocation4 + $0xa20] ss:$16 sps:$4 sm:$0xff]   ;;  %v5115_v52 = vld [vmem:[#allocation4 + $0x804] ss:$16 sps:$4 sm:$0xff]  }
  0xa7   :  { %3384 = vmatprep.subr.bf16.mxu1 %v5036_v53  ;;  %v5118_v53 = vld [vmem:[#allocation4 + $0xa04] ss:$16 sps:$4 sm:$0xff]  }
  0xa9   :  { %3344 = vmatpush2.bf16.msra.mxu0 %v5031_v54  ;;  %v5113_v54 = vld [vmem:[#allocation4 + $0x800] ss:$16 sps:$4 sm:$0xff]  }
  0xaa   :  { %3385 = vmatpush2.bf16.msra.mxu1 %v5034_v55  ;;  %3345 = vmatprep.subr.bf16.mxu0 %v5039_v56  ;;  %v5116_v55 = vld [vmem:[#allocation4 + $0xa00] ss:$16 sps:$4 sm:$0xff]   ;;  %v5121_v56 = vld [vmem:[#allocation4 + $0x9e4] ss:$16 sps:$4 sm:$0xff]  }
  0xab   :  { %3386 = vmatprep.subr.bf16.mxu1 %v5042_v57  ;;  %v5124_v57 = vld [vmem:[#allocation4 + $0xbe4] ss:$16 sps:$4 sm:$0xff]  }
  0xad   :  { %3346 = vmatpush2.bf16.msra.mxu0 %v5037_v58  ;;  %v5119_v58 = vld [vmem:[#allocation4 + $0x9e0] ss:$16 sps:$4 sm:$0xff]  }
  0xae   :  { %3387 = vmatpush2.bf16.msra.mxu1 %v5040_v59  ;;  %3347 = vmatprep.subr.bf16.mxu0 %v5045_v60  ;;  %v5122_v59 = vld [vmem:[#allocation4 + $0xbe0] ss:$16 sps:$4 sm:$0xff]   ;;  %v5127_v60 = vld [vmem:[#allocation4 + $0x9c4] ss:$16 sps:$4 sm:$0xff]  }
  0xaf   :  { %3388 = vmatprep.subr.bf16.mxu1 %v5048_v61  ;;  %v5130_v61 = vld [vmem:[#allocation4 + $0xbc4] ss:$16 sps:$4 sm:$0xff]  }
  0xb1   :  { %3348 = vmatpush2.bf16.msra.mxu0 %v5043_v62  ;;  %v5125_v62 = vld [vmem:[#allocation4 + $0x9c0] ss:$16 sps:$4 sm:$0xff]  }
  0xb2   :  { %3389 = vmatpush2.bf16.msra.mxu1 %v5046_v63  ;;  %3349 = vmatprep.subr.bf16.mxu0 %v5051_v0  ;;  %v5128_v63 = vld [vmem:[#allocation4 + $0xbc0] ss:$16 sps:$4 sm:$0xff]   ;;  %v5133_v0 = vld [vmem:[#allocation4 + $0x9a4] ss:$16 sps:$4 sm:$0xff]  }
  0xb3   :  { %3390 = vmatprep.subr.bf16.mxu1 %v5054_v1  ;;  %v5136_v1 = vld [vmem:[#allocation4 + $0xba4] ss:$16 sps:$4 sm:$0xff]  }
  0xb5   :  { %3350 = vmatpush2.bf16.msra.mxu0 %v5049_v2  ;;  %v5131_v2 = vld [vmem:[#allocation4 + $0x9a0] ss:$16 sps:$4 sm:$0xff]  }
  0xb6   :  { %3391 = vmatpush2.bf16.msra.mxu1 %v5052_v3  ;;  %3351 = vmatprep.subr.bf16.mxu0 %v5057_v4  ;;  %v5134_v3 = vld [vmem:[#allocation4 + $0xba0] ss:$16 sps:$4 sm:$0xff]   ;;  %v5139_v4 = vld [vmem:[#allocation4 + $0x984] ss:$16 sps:$4 sm:$0xff]  }
  0xb7   :  { %3392 = vmatprep.subr.bf16.mxu1 %v5060_v5  ;;  %v5142_v5 = vld [vmem:[#allocation4 + $0xb84] ss:$16 sps:$4 sm:$0xff]  }
  0xb9   :  { %3352 = vmatpush2.bf16.msra.mxu0 %v5055_v8  ;;  %v5137_v8 = vld [vmem:[#allocation4 + $0x980] ss:$16 sps:$4 sm:$0xff]  }
  0xba   :  { %3393 = vmatpush2.bf16.msra.mxu1 %v5058_v9  ;;  %3353 = vmatprep.subr.bf16.mxu0 %v5063_v10  ;;  %v5140_v9 = vld [vmem:[#allocation4 + $0xb80] ss:$16 sps:$4 sm:$0xff]   ;;  %v5145_v10 = vld [vmem:[#allocation4 + $0x964] ss:$16 sps:$4 sm:$0xff]  }
  0xbb   :  { %3394 = vmatprep.subr.bf16.mxu1 %v5066_v11  ;;  %v5148_v11 = vld [vmem:[#allocation4 + $0xb64] ss:$16 sps:$4 sm:$0xff]  }
  0xbd   :  { %3354 = vmatpush2.bf16.msra.mxu0 %v5061_v12  ;;  %v5143_v12 = vld [vmem:[#allocation4 + $0x960] ss:$16 sps:$4 sm:$0xff]  }
  0xbe   :  { %3395 = vmatpush2.bf16.msra.mxu1 %v5064_v13  ;;  %3405 = vmatprep.subr.bf16.mxu0 %v5073_v14  ;;  %v5146_v13 = vld [vmem:[#allocation4 + $0xb60] ss:$16 sps:$4 sm:$0xff]   ;;  %v5151_v14 = vld [vmem:[#allocation4 + $0x944] ss:$16 sps:$4 sm:$0xff]  }
  0xbf   :  { %3446 = vmatprep.subr.bf16.mxu1 %v5076_v15  ;;  %v5154_v15 = vld [vmem:[#allocation4 + $0xb44] ss:$16 sps:$4 sm:$0xff]  }
  0xc0   :  { %3356 = vmatmul.mubr.bf16.vlgmr.msra.gmra.mxu0 %v5876_v16 }
  0xc1   :  { %3397 = vmatmul.mubr.bf16.vlgmr.msra.gmra.mxu1 %v5880_v17  ;;  %3406 = vmatpush1.bf16.msra.mxu0 %v5071_v18  ;;  %v5149_v18 = vld [vmem:[#allocation4 + $0x940] ss:$16 sps:$4 sm:$0xff]  }
  0xc2   :  { %3447 = vmatpush1.bf16.msra.mxu1 %v5074_v19  ;;  %3407 = vmatprep.subr.bf16.mxu0 %v5079_v20  ;;  %v5152_v19 = vld [vmem:[#allocation4 + $0xb40] ss:$16 sps:$4 sm:$0xff]   ;;  %v5157_v20 = vld [vmem:[#allocation4 + $0x924] ss:$16 sps:$4 sm:$0xff]  }
  0xc3   :  { %3448 = vmatprep.subr.bf16.mxu1 %v5082_v21  ;;  %3437 = vmatprep.mubr.bf16.mxu0 %v5888_v24  ;;  %v5160_v21 = vld [vmem:[#allocation4 + $0xb24] ss:$16 sps:$4 sm:$0xff]  }
  0xc4   :  { %3478 = vmatprep.mubr.bf16.mxu1 %v5892_v25 }
  0xc5   :  { %3408 = vmatpush1.bf16.msra.mxu0 %v5077_v26  ;;  %v5155_v26 = vld [vmem:[#allocation4 + $0x920] ss:$16 sps:$4 sm:$0xff]  }
  0xc6   :  { %3449 = vmatpush1.bf16.msra.mxu1 %v5080_v27  ;;  %3409 = vmatprep.subr.bf16.mxu0 %v5085_v28  ;;  %v5158_v27 = vld [vmem:[#allocation4 + $0xb20] ss:$16 sps:$4 sm:$0xff]   ;;  %v5163_v28 = vld [vmem:[#allocation4 + $0x904] ss:$16 sps:$4 sm:$0xff]  }
  0xc7   :  { %3450 = vmatprep.subr.bf16.mxu1 %v5088_v29  ;;  %v5166_v29 = vld [vmem:[#allocation4 + $0xb04] ss:$16 sps:$4 sm:$0xff]  }
  0xc9   :  { %3410 = vmatpush1.bf16.msra.mxu0 %v5083_v30  ;;  %v5161_v30 = vld [vmem:[#allocation4 + $0x900] ss:$16 sps:$4 sm:$0xff]  }
  0xca   :  { %3451 = vmatpush1.bf16.msra.mxu1 %v5086_v31  ;;  %3411 = vmatprep.subr.bf16.mxu0 %v5091_v32  ;;  %v5164_v31 = vld [vmem:[#allocation4 + $0xb00] ss:$16 sps:$4 sm:$0xff]   ;;  %v5173_v32 = vld [vmem:[#allocation4 + $0xce4] ss:$16 sps:$4 sm:$0xff]  }
  0xcb   :  { %3452 = vmatprep.subr.bf16.mxu1 %v5094_v33  ;;  %v5176_v33 = vld [vmem:[#allocation4 + $0xee4] ss:$16 sps:$4 sm:$0xff]  }
  0xcd   :  { %3412 = vmatpush1.bf16.msra.mxu0 %v5089_v34  ;;  %v5171_v34 = vld [vmem:[#allocation4 + $0xce0] ss:$16 sps:$4 sm:$0xff]  }
  0xce   :  { %3453 = vmatpush1.bf16.msra.mxu1 %v5092_v35  ;;  %3413 = vmatprep.subr.bf16.mxu0 %v5097_v38  ;;  %v5898_v35 = vld [vmem:[#allocation2 + $0x30] sm:$0xff]  ;;  %v5902_v38 = vcombine.low %v5882_v22, %v5882_v22 }
  0xcf   :  { %3454 = vmatprep.subr.bf16.mxu1 %v5100_v39  ;;  %v5906_v39 = vcombine.low %v5884_v23, %v5884_v23  ;;  %v5177_v23 = vld [vmem:[#allocation4 + $0xcc0] ss:$16 sps:$4 sm:$0xff]  }
  0xd1   :  { %3414 = vmatpush1.bf16.msra.mxu0 %v5095_v40  ;;  %v5908_v40 = vld [vmem:[#allocation2 + $0x38] sm:$0xff] }
  0xd2   :  { %3455 = vmatpush1.bf16.msra.mxu1 %v5098_v41  ;;  %3415 = vmatprep.subr.bf16.mxu0 %v5103_v42  ;;  %v5174_v41 = vld [vmem:[#allocation4 + $0xee0] ss:$16 sps:$4 sm:$0xff]   ;;  %v5179_v42 = vld [vmem:[#allocation4 + $0xcc4] ss:$16 sps:$4 sm:$0xff]   ;;  %v5916_v22 = vcombine.high %v5908_v40, %v5908_v40 }
  0xd3   :  { %3456 = vmatprep.subr.bf16.mxu1 %v5106_v43  ;;  %v5182_v43 = vld [vmem:[#allocation4 + $0xec4] ss:$16 sps:$4 sm:$0xff]  }
  0xd5   :  { %3416 = vmatpush1.bf16.msra.mxu0 %v5101_v44  ;;  %v5912_v44 = vcombine.high %v5898_v35, %v5898_v35 }
  0xd6   :  { %3457 = vmatpush1.bf16.msra.mxu1 %v5104_v45  ;;  %3417 = vmatprep.subr.bf16.mxu0 %v5109_v46  ;;  %v5180_v45 = vld [vmem:[#allocation4 + $0xec0] ss:$16 sps:$4 sm:$0xff]   ;;  %v5185_v46 = vld [vmem:[#allocation4 + $0xca4] ss:$16 sps:$4 sm:$0xff]  }
  0xd7   :  { %3458 = vmatprep.subr.bf16.mxu1 %v5112_v48  ;;  %v5188_v48 = vld [vmem:[#allocation4 + $0xea4] ss:$16 sps:$4 sm:$0xff]  }
  0xd9   :  { %3418 = vmatpush1.bf16.msra.mxu0 %v5107_v49  ;;  %v5183_v49 = vld [vmem:[#allocation4 + $0xca0] ss:$16 sps:$4 sm:$0xff]  }
  0xda   :  { %3459 = vmatpush1.bf16.msra.mxu1 %v5110_v50  ;;  %3419 = vmatprep.subr.bf16.mxu0 %v5115_v52  ;;  %v5186_v50 = vld [vmem:[#allocation4 + $0xea0] ss:$16 sps:$4 sm:$0xff]   ;;  %v5191_v52 = vld [vmem:[#allocation4 + $0xc84] ss:$16 sps:$4 sm:$0xff]  }
  0xdb   :  { %3460 = vmatprep.subr.bf16.mxu1 %v5118_v53  ;;  %v5194_v53 = vld [vmem:[#allocation4 + $0xe84] ss:$16 sps:$4 sm:$0xff]  }
  0xdd   :  { %3420 = vmatpush1.bf16.msra.mxu0 %v5113_v54  ;;  %v5189_v54 = vld [vmem:[#allocation4 + $0xc80] ss:$16 sps:$4 sm:$0xff]  }
  0xde   :  { %3461 = vmatpush1.bf16.msra.mxu1 %v5116_v55  ;;  %3421 = vmatprep.subr.bf16.mxu0 %v5121_v56  ;;  %v5192_v55 = vld [vmem:[#allocation4 + $0xe80] ss:$16 sps:$4 sm:$0xff]   ;;  %v5197_v56 = vld [vmem:[#allocation4 + $0xc64] ss:$16 sps:$4 sm:$0xff]  }
  0xdf   :  { %3462 = vmatprep.subr.bf16.mxu1 %v5124_v57  ;;  %v5200_v57 = vld [vmem:[#allocation4 + $0xe64] ss:$16 sps:$4 sm:$0xff]  }
  0xe1   :  { %3422 = vmatpush2.bf16.msra.mxu0 %v5119_v58  ;;  %v5195_v58 = vld [vmem:[#allocation4 + $0xc60] ss:$16 sps:$4 sm:$0xff]  }
  0xe2   :  { %3463 = vmatpush2.bf16.msra.mxu1 %v5122_v59  ;;  %3423 = vmatprep.subr.bf16.mxu0 %v5127_v60  ;;  %v5198_v59 = vld [vmem:[#allocation4 + $0xe60] ss:$16 sps:$4 sm:$0xff]   ;;  %v5203_v60 = vld [vmem:[#allocation4 + $0xc44] ss:$16 sps:$4 sm:$0xff]  }
  0xe3   :  { %3464 = vmatprep.subr.bf16.mxu1 %v5130_v61  ;;  %v5206_v61 = vld [vmem:[#allocation4 + $0xe44] ss:$16 sps:$4 sm:$0xff]  }
  0xe5   :  { %3424 = vmatpush2.bf16.msra.mxu0 %v5125_v62  ;;  %v5201_v62 = vld [vmem:[#allocation4 + $0xc40] ss:$16 sps:$4 sm:$0xff]  }
  0xe6   :  { %3465 = vmatpush2.bf16.msra.mxu1 %v5128_v63  ;;  %3425 = vmatprep.subr.bf16.mxu0 %v5133_v0  ;;  %v5204_v63 = vld [vmem:[#allocation4 + $0xe40] ss:$16 sps:$4 sm:$0xff]   ;;  %v5209_v0 = vld [vmem:[#allocation4 + $0xc24] ss:$16 sps:$4 sm:$0xff]  }
  0xe7   :  { %3466 = vmatprep.subr.bf16.mxu1 %v5136_v1  ;;  %v5212_v1 = vld [vmem:[#allocation4 + $0xe24] ss:$16 sps:$4 sm:$0xff]  }
  0xe9   :  { %3426 = vmatpush2.bf16.msra.mxu0 %v5131_v2  ;;  %v5207_v2 = vld [vmem:[#allocation4 + $0xc20] ss:$16 sps:$4 sm:$0xff]  }
  0xea   :  { %3467 = vmatpush2.bf16.msra.mxu1 %v5134_v3  ;;  %3427 = vmatprep.subr.bf16.mxu0 %v5139_v4  ;;  %v5210_v3 = vld [vmem:[#allocation4 + $0xe20] ss:$16 sps:$4 sm:$0xff]   ;;  %v5215_v4 = vld [vmem:[#allocation4 + $0xc04] ss:$16 sps:$4 sm:$0xff]  }
  0xeb   :  { %3468 = vmatprep.subr.bf16.mxu1 %v5142_v5  ;;  %v5218_v5 = vld [vmem:[#allocation4 + $0xe04] ss:$16 sps:$4 sm:$0xff]  }
  0xed   :  { %3428 = vmatpush2.bf16.msra.mxu0 %v5137_v8  ;;  %v5213_v8 = vld [vmem:[#allocation4 + $0xc00] ss:$16 sps:$4 sm:$0xff]  }
  0xee   :  { %3469 = vmatpush2.bf16.msra.mxu1 %v5140_v9  ;;  %3429 = vmatprep.subr.bf16.mxu0 %v5145_v10  ;;  %v5216_v9 = vld [vmem:[#allocation4 + $0xe00] ss:$16 sps:$4 sm:$0xff]   ;;  %v5221_v10 = vld [vmem:[#allocation4 + $0xde4] ss:$16 sps:$4 sm:$0xff]  }
  0xef   :  { %3470 = vmatprep.subr.bf16.mxu1 %v5148_v11  ;;  %v5224_v11 = vld [vmem:[#allocation4 + $0xfe4] ss:$16 sps:$4 sm:$0xff]  }
  0xf1   :  { %3430 = vmatpush2.bf16.msra.mxu0 %v5143_v12  ;;  %v5219_v12 = vld [vmem:[#allocation4 + $0xde0] ss:$16 sps:$4 sm:$0xff]  }
  0xf2   :  { %3471 = vmatpush2.bf16.msra.mxu1 %v5146_v13  ;;  %3431 = vmatprep.subr.bf16.mxu0 %v5151_v14  ;;  %v5222_v13 = vld [vmem:[#allocation4 + $0xfe0] ss:$16 sps:$4 sm:$0xff]   ;;  %v5227_v14 = vld [vmem:[#allocation4 + $0xdc4] ss:$16 sps:$4 sm:$0xff]  }
  0xf3   :  { %3472 = vmatprep.subr.bf16.mxu1 %v5154_v15  ;;  %v5230_v15 = vld [vmem:[#allocation4 + $0xfc4] ss:$16 sps:$4 sm:$0xff]  }
  0xf5   :  { %3432 = vmatpush2.bf16.msra.mxu0 %v5149_v18  ;;  %v5225_v18 = vld [vmem:[#allocation4 + $0xdc0] ss:$16 sps:$4 sm:$0xff]  }
  0xf6   :  { %3473 = vmatpush2.bf16.msra.mxu1 %v5152_v19  ;;  %3433 = vmatprep.subr.bf16.mxu0 %v5157_v20  ;;  %v5228_v19 = vld [vmem:[#allocation4 + $0xfc0] ss:$16 sps:$4 sm:$0xff]   ;;  %v5233_v20 = vld [vmem:[#allocation4 + $0xda4] ss:$16 sps:$4 sm:$0xff]  }
  0xf7   :  { %3474 = vmatprep.subr.bf16.mxu1 %v5160_v21  ;;  %v5236_v21 = vld [vmem:[#allocation4 + $0xfa4] ss:$16 sps:$4 sm:$0xff]  }
  0xf9   :  { %3434 = vmatpush2.bf16.msra.mxu0 %v5155_v26  ;;  %v5231_v26 = vld [vmem:[#allocation4 + $0xda0] ss:$16 sps:$4 sm:$0xff]  }
  0xfa   :  { %3475 = vmatpush2.bf16.msra.mxu1 %v5158_v27  ;;  %3435 = vmatprep.subr.bf16.mxu0 %v5163_v28  ;;  %v5234_v27 = vld [vmem:[#allocation4 + $0xfa0] ss:$16 sps:$4 sm:$0xff]   ;;  %v5239_v28 = vld [vmem:[#allocation4 + $0xd84] ss:$16 sps:$4 sm:$0xff]  }
  0xfb   :  { %3476 = vmatprep.subr.bf16.mxu1 %v5166_v29  ;;  %v5242_v29 = vld [vmem:[#allocation4 + $0xf84] ss:$16 sps:$4 sm:$0xff]  }
  0xfd   :  { %3436 = vmatpush2.bf16.msra.mxu0 %v5161_v30  ;;  %v5237_v30 = vld [vmem:[#allocation4 + $0xd80] ss:$16 sps:$4 sm:$0xff]  }
  0xfe   :  { %3477 = vmatpush2.bf16.msra.mxu1 %v5164_v31  ;;  %3487 = vmatprep.subr.bf16.mxu0 %v5173_v32  ;;  %v5240_v31 = vld [vmem:[#allocation4 + $0xf80] ss:$16 sps:$4 sm:$0xff]   ;;  %v5245_v32 = vld [vmem:[#allocation4 + $0xd64] ss:$16 sps:$4 sm:$0xff]  }
  0xff   :  { %3528 = vmatprep.subr.bf16.mxu1 %v5176_v33  ;;  %v5248_v33 = vld [vmem:[#allocation4 + $0xf64] ss:$16 sps:$4 sm:$0xff]  }
 0x100   :  { %3438 = vmatmul.mubr.bf16.vlgmr.msra.gmra.mxu0 %v5902_v38 }
 0x101   :  { %3479 = vmatmul.mubr.bf16.vlgmr.msra.gmra.mxu1 %v5906_v39  ;;  %3488 = vmatpush1.bf16.msra.mxu0 %v5171_v34  ;;  %v5243_v34 = vld [vmem:[#allocation4 + $0xd60] ss:$16 sps:$4 sm:$0xff]  }
 0x102   :  { %3529 = vmatpush1.bf16.msra.mxu1 %v5174_v41  ;;  %3489 = vmatprep.subr.bf16.mxu0 %v5179_v42  ;;  %v5246_v41 = vld [vmem:[#allocation4 + $0xf60] ss:$16 sps:$4 sm:$0xff]   ;;  %v5251_v42 = vld [vmem:[#allocation4 + $0xd44] ss:$16 sps:$4 sm:$0xff]  }
 0x103   :  { %3530 = vmatprep.subr.bf16.mxu1 %v5182_v43  ;;  %3519 = vmatprep.mubr.bf16.mxu0 %v5912_v44  ;;  %v5254_v43 = vld [vmem:[#allocation4 + $0xf44] ss:$16 sps:$4 sm:$0xff]  }
 0x104   :  { %3560 = vmatprep.mubr.bf16.mxu1 %v5916_v22 }
 0x105   :  { %3490 = vmatpush1.bf16.msra.mxu0 %v5177_v23  ;;  %v5249_v23 = vld [vmem:[#allocation4 + $0xd40] ss:$16 sps:$4 sm:$0xff]  }
 0x106   :  { %3531 = vmatpush1.bf16.msra.mxu1 %v5180_v45  ;;  %3491 = vmatprep.subr.bf16.mxu0 %v5185_v46  ;;  %v5252_v45 = vld [vmem:[#allocation4 + $0xf40] ss:$16 sps:$4 sm:$0xff]   ;;  %v605_v46 = vlaneseq }
 0x107   :  { %3532 = vmatprep.subr.bf16.mxu1 %v5188_v48  ;;  %v5257_v48 = vld [vmem:[#allocation4 + $0xd24] ss:$16 sps:$4 sm:$0xff]  }
 0x109   :  { %3492 = vmatpush1.bf16.msra.mxu0 %v5183_v49  ;;  %v5260_v49 = vld [vmem:[#allocation4 + $0xf24] ss:$16 sps:$4 sm:$0xff]  }
 0x10a   :  { %3533 = vmatpush1.bf16.msra.mxu1 %v5186_v50  ;;  %3493 = vmatprep.subr.bf16.mxu0 %v5191_v52  ;;  %v5255_v50 = vld [vmem:[#allocation4 + $0xd20] ss:$16 sps:$4 sm:$0xff]  }
 0x10b   :  { %3534 = vmatprep.subr.bf16.mxu1 %v5194_v53  ;;  %v5258_v52 = vld [vmem:[#allocation4 + $0xf20] ss:$16 sps:$4 sm:$0xff]   ;;  %v5922_v53 = vshrl.u32 %v605_v46, 7  ;;  %v5304_v46 = vld [vmem:[#allocation4 + $0x248] ss:$16 sps:$4 sm:$0xff]  }
 0x10d   :  { %3494 = vmatpush1.bf16.msra.mxu0 %v5189_v54  ;;  %v5263_v54 = vld [vmem:[#allocation4 + $0xd04] ss:$16 sps:$4 sm:$0xff]  }
 0x10e   :  { %3535 = vmatpush1.bf16.msra.mxu1 %v5192_v55  ;;  %3495 = vmatprep.subr.bf16.mxu0 %v5197_v56  ;;  %v5266_v55 = vld [vmem:[#allocation4 + $0xf04] ss:$16 sps:$4 sm:$0xff]   ;;  %v5261_v56 = vld [vmem:[#allocation4 + $0xd00] ss:$16 sps:$4 sm:$0xff]  }
 0x10f   :  { %3536 = vmatprep.subr.bf16.mxu1 %v5200_v57  ;;  %v5264_v57 = vld [vmem:[#allocation4 + $0xf00] ss:$16 sps:$4 sm:$0xff]  }
 0x111   :  { %3496 = vmatpush1.bf16.msra.mxu0 %v5195_v58  ;;  %v603_v58 = vld [vmem:[#allocation6] sm:$0xf] }
 0x112   :  { %3537 = vmatpush1.bf16.msra.mxu1 %v5198_v59  ;;  %3497 = vmatprep.subr.bf16.mxu0 %v5203_v60  ;;  %v607_v59 = vsub.s32 0, %v5922_v53  ;;  %v5273_v60 = vld [vmem:[#allocation4 + $0xec] ss:$16 sps:$4 sm:$0xff]  }
 0x113   :  { %3538 = vmatprep.subr.bf16.mxu1 %v5206_v61  ;;  %v5276_v61 = vld [vmem:[#allocation4 + $0x2ec] ss:$16 sps:$4 sm:$0xff]  }
 0x115   :  { %3498 = vmatpush1.bf16.msra.mxu0 %v5201_v62  ;;  %v611_v62 = vsub.s32 1, %v5922_v53 }
 0x116   :  { %3539 = vmatpush1.bf16.msra.mxu1 %v5204_v63  ;;  %3499 = vmatprep.subr.bf16.mxu0 %v5209_v0  ;;  %v5928_v63 = vcombine.low %v5898_v35, %v5898_v35  ;;  %v5932_v0 = vcombine.low %v5908_v40, %v5908_v40  ;;  %v5277_v35 = vld [vmem:[#allocation4 + $0xc8] ss:$16 sps:$4 sm:$0xff]  }
 0x117   :  { %3540 = vmatprep.subr.bf16.mxu1 %v5212_v1  ;;  %v5271_v1 = vld [vmem:[#allocation4 + $0xe8] ss:$16 sps:$4 sm:$0xff]  }
 0x118   :  { %v5280_v40 = vld [vmem:[#allocation4 + $0x2c8] ss:$16 sps:$4 sm:$0xff]  }
 0x119   :  { %3500 = vmatpush1.bf16.msra.mxu0 %v5207_v2  ;;  %v608_v2 = vrot.slane %v603_v58, %v607_v59  ;;  %v5324_v59 = vld [vmem:[#allocation4 + $0x3ec] ss:$16 sps:$4 sm:$0xff]  }
 0x11a   :  { %3541 = vmatpush1.bf16.msra.mxu1 %v5210_v3  ;;  %3501 = vmatprep.subr.bf16.mxu0 %v5215_v4  ;;  %v5274_v3 = vld [vmem:[#allocation4 + $0x2e8] ss:$16 sps:$4 sm:$0xff]   ;;  %v5279_v4 = vld [vmem:[#allocation4 + $0xcc] ss:$16 sps:$4 sm:$0xff]  }
 0x11b   :  { %3542 = vmatprep.subr.bf16.mxu1 %v5218_v5  ;;  %v5282_v5 = vld [vmem:[#allocation4 + $0x2cc] ss:$16 sps:$4 sm:$0xff]  }
 0x11d   :  { %3502 = vmatpush1.bf16.msra.mxu0 %v5213_v8  ;;  %v612_v8 = vrot.slane %v603_v58, %v611_v62  ;;  %v5321_v58 = vld [vmem:[#allocation4 + $0x1ec] ss:$16 sps:$4 sm:$0xff]  }
 0x11e   :  { %3543 = vmatpush1.bf16.msra.mxu1 %v5216_v9  ;;  %3503 = vmatprep.subr.bf16.mxu0 %v5221_v10  ;;  %v5327_v62 = vld [vmem:[#allocation4 + $0x1cc] ss:$16 sps:$4 sm:$0xff]  }
 0x11f   :  { %3544 = vmatprep.subr.bf16.mxu1 %v5224_v11 }
 0x121   :  { %3504 = vmatpush2.bf16.msra.mxu0 %v5219_v12 }
 0x122   :  { %3545 = vmatpush2.bf16.msra.mxu1 %v5222_v13  ;;  %3505 = vmatprep.subr.bf16.mxu0 %v5227_v14  ;;  %v5285_v14 = vld [vmem:[#allocation4 + $0xac] ss:$16 sps:$4 sm:$0xff]  }
 0x123   :  { %3546 = vmatprep.subr.bf16.mxu1 %v5230_v15  ;;  %v5288_v15 = vld [vmem:[#allocation4 + $0x2ac] ss:$16 sps:$4 sm:$0xff]  }
 0x125   :  { %3506 = vmatpush2.bf16.msra.mxu0 %v5225_v18 }
 0x126   :  { %3547 = vmatpush2.bf16.msra.mxu1 %v5228_v19  ;;  %3507 = vmatprep.subr.bf16.mxu0 %v5233_v20 }
 0x127   :  { %3548 = vmatprep.subr.bf16.mxu1 %v5236_v21 }
 0x129   :  { %3508 = vmatpush2.bf16.msra.mxu0 %v5231_v26  ;;  %v5283_v26 = vld [vmem:[#allocation4 + $0xa8] ss:$16 sps:$4 sm:$0xff]  }
 0x12a   :  { %3549 = vmatpush2.bf16.msra.mxu1 %v5234_v27  ;;  %3509 = vmatprep.subr.bf16.mxu0 %v5239_v28  ;;  %v5286_v28 = vld [vmem:[#allocation4 + $0x2a8] ss:$16 sps:$4 sm:$0xff]  }
 0x12b   :  { %3550 = vmatprep.subr.bf16.mxu1 %v5242_v29 }
 0x12d   :  { %3510 = vmatpush2.bf16.msra.mxu0 %v5237_v30 }
 0x12e   :  { %3551 = vmatpush2.bf16.msra.mxu1 %v5240_v31  ;;  %3511 = vmatprep.subr.bf16.mxu0 %v5245_v32  ;;  %v5291_v31 = vld [vmem:[#allocation4 + $0x8c] ss:$16 sps:$4 sm:$0xff]  }
 0x12f   :  { %3552 = vmatprep.subr.bf16.mxu1 %v5248_v33  ;;  %v5294_v32 = vld [vmem:[#allocation4 + $0x28c] ss:$16 sps:$4 sm:$0xff]   ;;  %v5289_v33 = vld [vmem:[#allocation4 + $0x88] ss:$16 sps:$4 sm:$0xff]  }
 0x131   :  { %3512 = vmatpush2.bf16.msra.mxu0 %v5243_v34  ;;  %v5300_v34 = vld [vmem:[#allocation4 + $0x26c] ss:$16 sps:$4 sm:$0xff]  }
 0x132   :  { %3553 = vmatpush2.bf16.msra.mxu1 %v5246_v41  ;;  %3513 = vmatprep.subr.bf16.mxu0 %v5251_v42  ;;  %v5295_v41 = vld [vmem:[#allocation4 + $0x68] ss:$16 sps:$4 sm:$0xff]  }
 0x133   :  { %3554 = vmatprep.subr.bf16.mxu1 %v5254_v43  ;;  %v5298_v42 = vld [vmem:[#allocation4 + $0x268] ss:$16 sps:$4 sm:$0xff]   ;;  %v5303_v43 = vld [vmem:[#allocation4 + $0x4c] ss:$16 sps:$4 sm:$0xff]  }
 0x135   :  { %3514 = vmatpush2.bf16.msra.mxu0 %v5249_v23  ;;  %v5306_v23 = vld [vmem:[#allocation4 + $0x24c] ss:$16 sps:$4 sm:$0xff]  }
 0x136   :  { %3555 = vmatpush2.bf16.msra.mxu1 %v5252_v45  ;;  %3515 = vmatprep.subr.bf16.mxu0 %v5257_v48  ;;  %v5301_v45 = vld [vmem:[#allocation4 + $0x48] ss:$16 sps:$4 sm:$0xff]   ;;  %v5309_v48 = vld [vmem:[#allocation4 + $0x2c] ss:$16 sps:$4 sm:$0xff]  }
 0x137   :  { %3556 = vmatprep.subr.bf16.mxu1 %v5260_v49  ;;  %v5312_v49 = vld [vmem:[#allocation4 + $0x22c] ss:$16 sps:$4 sm:$0xff]  }
 0x139   :  { %3516 = vmatpush2.bf16.msra.mxu0 %v5255_v50  ;;  %v5307_v50 = vld [vmem:[#allocation4 + $0x28] ss:$16 sps:$4 sm:$0xff]  }
 0x13a   :  { %3557 = vmatpush2.bf16.msra.mxu1 %v5258_v52  ;;  %3517 = vmatprep.subr.bf16.mxu0 %v5263_v54  ;;  %v5310_v52 = vld [vmem:[#allocation4 + $0x228] ss:$16 sps:$4 sm:$0xff]   ;;  %v5315_v54 = vld [vmem:[#allocation4 + $0xc] ss:$16 sps:$4 sm:$0xff]  }
 0x13b   :  { %3558 = vmatprep.subr.bf16.mxu1 %v5266_v55  ;;  %v5318_v55 = vld [vmem:[#allocation4 + $0x20c] ss:$16 sps:$4 sm:$0xff]  }
 0x13d   :  { %3518 = vmatpush2.bf16.msra.mxu0 %v5261_v56  ;;  %v5313_v56 = vld [vmem:[#allocation4 + $0x8] ss:$16 sps:$4 sm:$0xff]  }
 0x13e   :  { %3559 = vmatpush2.bf16.msra.mxu1 %v5264_v57  ;;  %3569 = vmatprep.subr.bf16.mxu0 %v5273_v60  ;;  %v5316_v57 = vld [vmem:[#allocation4 + $0x208] ss:$16 sps:$4 sm:$0xff]  }
 0x13f   :  { %3610 = vmatprep.subr.bf16.mxu1 %v5276_v61  ;;  %v5319_v60 = vld [vmem:[#allocation4 + $0x1e8] ss:$16 sps:$4 sm:$0xff]  }
 0x140   :  { %v3275_v9 = vpop.f32.mrf.mxu0  ;;  %3520 = vmatmul.mubr.bf16.vlgmr.msra.gmra.mxu0 %v5928_v63  ;;  %v5322_v61 = vld [vmem:[#allocation4 + $0x3e8] ss:$16 sps:$4 sm:$0xff]  }
 0x141   :  { %v3316_v10 = vpop.f32.mrf.mxu1  ;;  %3561 = vmatmul.mubr.bf16.vlgmr.msra.gmra.mxu1 %v5932_v0  ;;  %v3276_v11 = vadd.f32 %v3275_v9, %v608_v2  ;;  %3570 = vmatpush1.bf16.msra.mxu0 %v5271_v1  ;;  %v5330_v1 = vld [vmem:[#allocation4 + $0x3cc] ss:$16 sps:$4 sm:$0xff]   ;;  %v5325_v2 = vld [vmem:[#allocation4 + $0x1c8] ss:$16 sps:$4 sm:$0xff]  }
 0x142   :  { %3611 = vmatpush1.bf16.msra.mxu1 %v5274_v3  ;;  %v3277_v12 = vpop.f32.mrf.mxu0  ;;  %3571 = vmatprep.subr.bf16.mxu0 %v5279_v4  ;;  %v5328_v3 = vld [vmem:[#allocation4 + $0x3c8] ss:$16 sps:$4 sm:$0xff]   ;;  %v5333_v4 = vld [vmem:[#allocation4 + $0x1ac] ss:$16 sps:$4 sm:$0xff]  }
 0x143   :  { %v3318_v13 = vpop.f32.mrf.mxu1  ;;  %3612 = vmatprep.subr.bf16.mxu1 %v5282_v5  ;;  %v5936_v18 = vadd.f32 %v3316_v10, %v3276_v11  ;;  %v3278_v19 = vadd.f32 %v3277_v12, %v612_v8  ;;  %3601 = vmatprep.mubr.bf16.mxu0 %v5848_v47  ;;  %v5292_v47 = vld [vmem:[#allocation4 + $0x288] ss:$16 sps:$4 sm:$0xff]   ;;  %v5336_v5 = vld [vmem:[#allocation4 + $0x3ac] ss:$16 sps:$4 sm:$0xff]  }
 0x144   :  { %3642 = vmatprep.mubr.bf16.mxu1 %v5850_v51  ;;  %v3279_v20 = vpop.f32.mrf.mxu0  ;;  %v5297_v51 = vld [vmem:[#allocation4 + $0x6c] ss:$16 sps:$4 sm:$0xff]   ;;  %v5331_v8 = vld [vmem:[#allocation4 + $0x1a8] ss:$16 sps:$4 sm:$0xff]  }
 0x145   :  { %v3320_v21 = vpop.f32.mrf.mxu1  ;;  %v5940_v27 = vadd.f32 %v3318_v13, %v3278_v19  ;;  %3572 = vmatpush1.bf16.msra.mxu0 %v5277_v35  ;;  %v5334_v9 = vld [vmem:[#allocation4 + $0x3a8] ss:$16 sps:$4 sm:$0xff]   ;;  %v5339_v10 = vld [vmem:[#allocation4 + $0x18c] ss:$16 sps:$4 sm:$0xff]  }
 0x146   :  { %3613 = vmatpush1.bf16.msra.mxu1 %v5280_v40  ;;  %v3280_v29 = vpop.f32.mrf.mxu0  ;;  %3573 = vmatprep.subr.bf16.mxu0 %v5285_v14  ;;  %v5342_v35 = vld [vmem:[#allocation4 + $0x38c] ss:$16 sps:$4 sm:$0xff]   ;;  %v5337_v11 = vld [vmem:[#allocation4 + $0x188] ss:$16 sps:$4 sm:$0xff]  }
 0x147   :  { %v3321_v30 = vpop.f32.mrf.mxu1  ;;  %3614 = vmatprep.subr.bf16.mxu1 %v5288_v15  ;;  %v5340_v40 = vld [vmem:[#allocation4 + $0x388] ss:$16 sps:$4 sm:$0xff]   ;;  %v5345_v12 = vld [vmem:[#allocation4 + $0x16c] ss:$16 sps:$4 sm:$0xff]  }
 0x148   :  { %v5348_v13 = vld [vmem:[#allocation4 + $0x36c] ss:$16 sps:$4 sm:$0xff]   ;;  %v5343_v14 = vld [vmem:[#allocation4 + $0x168] ss:$16 sps:$4 sm:$0xff]  }
 0x149   :  { %3574 = vmatpush1.bf16.msra.mxu0 %v5283_v26  ;;  %v5346_v15 = vld [vmem:[#allocation4 + $0x368] ss:$16 sps:$4 sm:$0xff]   ;;  %v5351_v19 = vld [vmem:[#allocation4 + $0x14c] ss:$16 sps:$4 sm:$0xff]  }
 0x14a   :  { %3615 = vmatpush1.bf16.msra.mxu1 %v5286_v28  ;;  %3575 = vmatprep.subr.bf16.mxu0 %v5291_v31  ;;  %v5354_v20 = vld [vmem:[#allocation4 + $0x34c] ss:$16 sps:$4 sm:$0xff]   ;;  %v5349_v21 = vld [vmem:[#allocation4 + $0x148] ss:$16 sps:$4 sm:$0xff]  }
 0x14b   :  { %3616 = vmatprep.subr.bf16.mxu1 %v5294_v32  ;;  %v5352_v26 = vld [vmem:[#allocation4 + $0x348] ss:$16 sps:$4 sm:$0xff]   ;;  %v5357_v28 = vld [vmem:[#allocation4 + $0x12c] ss:$16 sps:$4 sm:$0xff]  }
 0x14c   :  { %v5360_v29 = vld [vmem:[#allocation4 + $0x32c] ss:$16 sps:$4 sm:$0xff]   ;;  %v5355_v30 = vld [vmem:[#allocation4 + $0x128] ss:$16 sps:$4 sm:$0xff]  }
 0x14d   :  { %3576 = vmatpush1.bf16.msra.mxu0 %v5289_v33  ;;  %v5358_v31 = vld [vmem:[#allocation4 + $0x328] ss:$16 sps:$4 sm:$0xff]   ;;  %v5363_v32 = vld [vmem:[#allocation4 + $0x10c] ss:$16 sps:$4 sm:$0xff]  }
 0x14e   :  { %3617 = vmatpush1.bf16.msra.mxu1 %v5292_v47  ;;  %3577 = vmatprep.subr.bf16.mxu0 %v5297_v51  ;;  %v5366_v33 = vld [vmem:[#allocation4 + $0x30c] ss:$16 sps:$4 sm:$0xff]   ;;  %v5361_v47 = vld [vmem:[#allocation4 + $0x108] ss:$16 sps:$4 sm:$0xff]  }
 0x14f   :  { %3618 = vmatprep.subr.bf16.mxu1 %v5300_v34  ;;  %v5364_v51 = vld [vmem:[#allocation4 + $0x308] ss:$16 sps:$4 sm:$0xff]   ;;  %v5369_v34 = vld [vmem:[#allocation4 + $0x4ec] ss:$16 sps:$4 sm:$0xff]  }
 0x151   :  { %3578 = vmatpush1.bf16.msra.mxu0 %v5295_v41  ;;  %v5372_v41 = vld [vmem:[#allocation4 + $0x6ec] ss:$16 sps:$4 sm:$0xff]  }
 0x152   :  { %3619 = vmatpush1.bf16.msra.mxu1 %v5298_v42  ;;  %3579 = vmatprep.subr.bf16.mxu0 %v5303_v43  ;;  %v5367_v42 = vld [vmem:[#allocation4 + $0x4e8] ss:$16 sps:$4 sm:$0xff]  }
 0x153   :  { %3620 = vmatprep.subr.bf16.mxu1 %v5306_v23  ;;  %v5370_v43 = vld [vmem:[#allocation4 + $0x6e8] ss:$16 sps:$4 sm:$0xff]   ;;  %v5375_v23 = vld [vmem:[#allocation4 + $0x4cc] ss:$16 sps:$4 sm:$0xff]  }
 0x155   :  { %3580 = vmatpush1.bf16.msra.mxu0 %v5301_v45  ;;  %v5378_v45 = vld [vmem:[#allocation4 + $0x6cc] ss:$16 sps:$4 sm:$0xff]  }
 0x156   :  { %3621 = vmatpush1.bf16.msra.mxu1 %v5304_v46  ;;  %3581 = vmatprep.subr.bf16.mxu0 %v5309_v48  ;;  %v5373_v46 = vld [vmem:[#allocation4 + $0x4c8] ss:$16 sps:$4 sm:$0xff]  }
 0x157   :  { %3622 = vmatprep.subr.bf16.mxu1 %v5312_v49  ;;  %v5376_v48 = vld [vmem:[#allocation4 + $0x6c8] ss:$16 sps:$4 sm:$0xff]  }
 0x159   :  { %3582 = vmatpush1.bf16.msra.mxu0 %v5307_v50 }
 0x15a   :  { %3623 = vmatpush1.bf16.msra.mxu1 %v5310_v52  ;;  %3583 = vmatprep.subr.bf16.mxu0 %v5315_v54 }
 0x15b   :  { %3624 = vmatprep.subr.bf16.mxu1 %v5318_v55 }
 0x15d   :  { %3584 = vmatpush1.bf16.msra.mxu0 %v5313_v56  ;;  %v5381_v56 = vld [vmem:[#allocation4 + $0x4ac] ss:$16 sps:$4 sm:$0xff]  }
 0x15e   :  { %3625 = vmatpush1.bf16.msra.mxu1 %v5316_v57  ;;  %3585 = vmatprep.subr.bf16.mxu0 %v5321_v58  ;;  %v5384_v57 = vld [vmem:[#allocation4 + $0x6ac] ss:$16 sps:$4 sm:$0xff]  }
 0x15f   :  { %3626 = vmatprep.subr.bf16.mxu1 %v5324_v59 }
 0x161   :  { %3586 = vmatpush2.bf16.msra.mxu0 %v5319_v60  ;;  %v5379_v60 = vld [vmem:[#allocation4 + $0x4a8] ss:$16 sps:$4 sm:$0xff]  }
 0x162   :  { %3627 = vmatpush2.bf16.msra.mxu1 %v5322_v61  ;;  %3587 = vmatprep.subr.bf16.mxu0 %v5327_v62  ;;  %v5382_v61 = vld [vmem:[#allocation4 + $0x6a8] ss:$16 sps:$4 sm:$0xff]  }
 0x163   :  { %3628 = vmatprep.subr.bf16.mxu1 %v5330_v1 }
 0x165   :  { %3588 = vmatpush2.bf16.msra.mxu0 %v5325_v2  ;;  %v5387_v2 = vld [vmem:[#allocation4 + $0x48c] ss:$16 sps:$4 sm:$0xff]  }
 0x166   :  { %3629 = vmatpush2.bf16.msra.mxu1 %v5328_v3  ;;  %3589 = vmatprep.subr.bf16.mxu0 %v5333_v4  ;;  %v5390_v3 = vld [vmem:[#allocation4 + $0x68c] ss:$16 sps:$4 sm:$0xff]   ;;  %v5388_v4 = vld [vmem:[#allocation4 + $0x688] ss:$16 sps:$4 sm:$0xff]  }
 0x167   :  { %3630 = vmatprep.subr.bf16.mxu1 %v5336_v5  ;;  %v5391_v5 = vld [vmem:[#allocation4 + $0x468] ss:$16 sps:$4 sm:$0xff]  }
 0x169   :  { %3590 = vmatpush2.bf16.msra.mxu0 %v5331_v8  ;;  %v5394_v8 = vld [vmem:[#allocation4 + $0x668] ss:$16 sps:$4 sm:$0xff]  }
 0x16a   :  { %3631 = vmatpush2.bf16.msra.mxu1 %v5334_v9  ;;  %3591 = vmatprep.subr.bf16.mxu0 %v5339_v10  ;;  %v5399_v9 = vld [vmem:[#allocation4 + $0x44c] ss:$16 sps:$4 sm:$0xff]  }
 0x16b   :  { %3632 = vmatprep.subr.bf16.mxu1 %v5342_v35  ;;  %v5402_v10 = vld [vmem:[#allocation4 + $0x64c] ss:$16 sps:$4 sm:$0xff]   ;;  %v5397_v35 = vld [vmem:[#allocation4 + $0x448] ss:$16 sps:$4 sm:$0xff]  }
 0x16d   :  { %3592 = vmatpush2.bf16.msra.mxu0 %v5337_v11  ;;  %v5400_v11 = vld [vmem:[#allocation4 + $0x648] ss:$16 sps:$4 sm:$0xff]  }
 0x16e   :  { %3633 = vmatpush2.bf16.msra.mxu1 %v5340_v40  ;;  %3593 = vmatprep.subr.bf16.mxu0 %v5345_v12  ;;  %v5405_v40 = vld [vmem:[#allocation4 + $0x42c] ss:$16 sps:$4 sm:$0xff]  }
 0x16f   :  { %3634 = vmatprep.subr.bf16.mxu1 %v5348_v13  ;;  %v5408_v12 = vld [vmem:[#allocation4 + $0x62c] ss:$16 sps:$4 sm:$0xff]   ;;  %v5403_v13 = vld [vmem:[#allocation4 + $0x428] ss:$16 sps:$4 sm:$0xff]  }
 0x171   :  { %3594 = vmatpush2.bf16.msra.mxu0 %v5343_v14  ;;  %v5406_v14 = vld [vmem:[#allocation4 + $0x628] ss:$16 sps:$4 sm:$0xff]  }
 0x172   :  { %3635 = vmatpush2.bf16.msra.mxu1 %v5346_v15  ;;  %3595 = vmatprep.subr.bf16.mxu0 %v5351_v19  ;;  %v5411_v15 = vld [vmem:[#allocation4 + $0x40c] ss:$16 sps:$4 sm:$0xff]  }
 0x173   :  { %3636 = vmatprep.subr.bf16.mxu1 %v5354_v20  ;;  %v5414_v19 = vld [vmem:[#allocation4 + $0x60c] ss:$16 sps:$4 sm:$0xff]   ;;  %v5409_v20 = vld [vmem:[#allocation4 + $0x408] ss:$16 sps:$4 sm:$0xff]  }
 0x175   :  { %3596 = vmatpush2.bf16.msra.mxu0 %v5349_v21  ;;  %v5412_v21 = vld [vmem:[#allocation4 + $0x608] ss:$16 sps:$4 sm:$0xff]  }
 0x176   :  { %3637 = vmatpush2.bf16.msra.mxu1 %v5352_v26  ;;  %3597 = vmatprep.subr.bf16.mxu0 %v5357_v28  ;;  %v5417_v26 = vld [vmem:[#allocation4 + $0x5ec] ss:$16 sps:$4 sm:$0xff]  }
 0x177   :  { %3638 = vmatprep.subr.bf16.mxu1 %v5360_v29  ;;  %v5420_v28 = vld [vmem:[#allocation4 + $0x7ec] ss:$16 sps:$4 sm:$0xff]   ;;  %v5415_v29 = vld [vmem:[#allocation4 + $0x5e8] ss:$16 sps:$4 sm:$0xff]  }
 0x179   :  { %3598 = vmatpush2.bf16.msra.mxu0 %v5355_v30  ;;  %v5418_v30 = vld [vmem:[#allocation4 + $0x7e8] ss:$16 sps:$4 sm:$0xff]  }
 0x17a   :  { %3639 = vmatpush2.bf16.msra.mxu1 %v5358_v31  ;;  %3599 = vmatprep.subr.bf16.mxu0 %v5363_v32  ;;  %v5423_v31 = vld [vmem:[#allocation4 + $0x5cc] ss:$16 sps:$4 sm:$0xff]  }
 0x17b   :  { %3640 = vmatprep.subr.bf16.mxu1 %v5366_v33  ;;  %v5426_v32 = vld [vmem:[#allocation4 + $0x7cc] ss:$16 sps:$4 sm:$0xff]   ;;  %v5421_v33 = vld [vmem:[#allocation4 + $0x5c8] ss:$16 sps:$4 sm:$0xff]  }
 0x17d   :  { %3600 = vmatpush2.bf16.msra.mxu0 %v5361_v47  ;;  %v5424_v47 = vld [vmem:[#allocation4 + $0x7c8] ss:$16 sps:$4 sm:$0xff]  }
 0x17e   :  { %3641 = vmatpush2.bf16.msra.mxu1 %v5364_v51  ;;  %3651 = vmatprep.subr.bf16.mxu0 %v5369_v34  ;;  %v5429_v51 = vld [vmem:[#allocation4 + $0x5ac] ss:$16 sps:$4 sm:$0xff]  }
 0x17f   :  { %3692 = vmatprep.subr.bf16.mxu1 %v5372_v41  ;;  %v5432_v34 = vld [vmem:[#allocation4 + $0x7ac] ss:$16 sps:$4 sm:$0xff]   ;;  %v5427_v41 = vld [vmem:[#allocation4 + $0x5a8] ss:$16 sps:$4 sm:$0xff]  }
 0x180   :  { %v3357_v49 = vpop.f32.mrf.mxu0  ;;  %3602 = vmatmul.mubr.bf16.vlgmr.msra.gmra.mxu0 %v5854_v6 }
 0x181   :  { %v3398_v50 = vpop.f32.mrf.mxu1  ;;  %3643 = vmatmul.mubr.bf16.vlgmr.msra.gmra.mxu1 %v5856_v7  ;;  %v3358_v52 = vadd.f32 %v3357_v49, %v5936_v18  ;;  %3652 = vmatpush1.bf16.msra.mxu0 %v5367_v42  ;;  %v5430_v42 = vld [vmem:[#allocation4 + $0x7a8] ss:$16 sps:$4 sm:$0xff]   ;;  %v5444_v49 = vld [vmem:[#allocation4 + $0x76c] ss:$16 sps:$4 sm:$0xff]  }
 0x182   :  { %3693 = vmatpush1.bf16.msra.mxu1 %v5370_v43  ;;  %v3359_v54 = vpop.f32.mrf.mxu0  ;;  %3653 = vmatprep.subr.bf16.mxu0 %v5375_v23  ;;  %v5435_v43 = vld [vmem:[#allocation4 + $0x58c] ss:$16 sps:$4 sm:$0xff]  }
 0x183   :  { %v3400_v55 = vpop.f32.mrf.mxu1  ;;  %3694 = vmatprep.subr.bf16.mxu1 %v5378_v45  ;;  %v5945_v58 = vadd.f32 %v3398_v50, %v3358_v52  ;;  %v3360_v59 = vadd.f32 %v3359_v54, %v5940_v27  ;;  %3683 = vmatprep.mubr.bf16.mxu0 %v5866_v36  ;;  %v5385_v27 = vld [vmem:[#allocation4 + $0x488] ss:$16 sps:$4 sm:$0xff]   ;;  %v5393_v36 = vld [vmem:[#allocation4 + $0x46c] ss:$16 sps:$4 sm:$0xff]  }
 0x184   :  { %3724 = vmatprep.mubr.bf16.mxu1 %v5870_v37  ;;  %v3361_v6 = vpop.f32.mrf.mxu0  ;;  %v5396_v37 = vld [vmem:[#allocation4 + $0x66c] ss:$16 sps:$4 sm:$0xff]   ;;  %v5433_v45 = vld [vmem:[#allocation4 + $0x588] ss:$16 sps:$4 sm:$0xff]  }
 0x185   :  { %v3402_v7 = vpop.f32.mrf.mxu1  ;;  %v5950_v18 = vadd.f32 %v3400_v55, %v3360_v59  ;;  %3654 = vmatpush1.bf16.msra.mxu0 %v5373_v46  ;;  %v5438_v23 = vld [vmem:[#allocation4 + $0x78c] ss:$16 sps:$4 sm:$0xff]   ;;  %v5436_v46 = vld [vmem:[#allocation4 + $0x788] ss:$16 sps:$4 sm:$0xff]  }
 0x186   :  { %3695 = vmatpush1.bf16.msra.mxu1 %v5376_v48  ;;  %v3362_v62 = vpop.f32.mrf.mxu0  ;;  %3655 = vmatprep.subr.bf16.mxu0 %v5381_v56  ;;  %v5441_v48 = vld [vmem:[#allocation4 + $0x56c] ss:$16 sps:$4 sm:$0xff]   ;;  %v5439_v50 = vld [vmem:[#allocation4 + $0x568] ss:$16 sps:$4 sm:$0xff]  }
 0x187   :  { %v3403_v1 = vpop.f32.mrf.mxu1  ;;  %3696 = vmatprep.subr.bf16.mxu1 %v5384_v57  ;;  %v5442_v52 = vld [vmem:[#allocation4 + $0x768] ss:$16 sps:$4 sm:$0xff]   ;;  %v5447_v54 = vld [vmem:[#allocation4 + $0x54c] ss:$16 sps:$4 sm:$0xff]  }
 0x188   :  { %v5450_v55 = vld [vmem:[#allocation4 + $0x74c] ss:$16 sps:$4 sm:$0xff]   ;;  %v5445_v56 = vld [vmem:[#allocation4 + $0x548] ss:$16 sps:$4 sm:$0xff]  }
 0x189   :  { %3656 = vmatpush1.bf16.msra.mxu0 %v5379_v60  ;;  %v5448_v57 = vld [vmem:[#allocation4 + $0x748] ss:$16 sps:$4 sm:$0xff]   ;;  %v5453_v59 = vld [vmem:[#allocation4 + $0x52c] ss:$16 sps:$4 sm:$0xff]  }
 0x18a   :  { %3697 = vmatpush1.bf16.msra.mxu1 %v5382_v61  ;;  %3657 = vmatprep.subr.bf16.mxu0 %v5387_v2  ;;  %v5456_v60 = vld [vmem:[#allocation4 + $0x72c] ss:$16 sps:$4 sm:$0xff]   ;;  %v5451_v61 = vld [vmem:[#allocation4 + $0x528] ss:$16 sps:$4 sm:$0xff]  }
 0x18b   :  { %3698 = vmatprep.subr.bf16.mxu1 %v5390_v3  ;;  %v5454_v6 = vld [vmem:[#allocation4 + $0x728] ss:$16 sps:$4 sm:$0xff]   ;;  %v5459_v7 = vld [vmem:[#allocation4 + $0x50c] ss:$16 sps:$4 sm:$0xff]  }
 0x18c   :  { %v5462_v62 = vld [vmem:[#allocation4 + $0x70c] ss:$16 sps:$4 sm:$0xff]   ;;  %v5457_v1 = vld [vmem:[#allocation4 + $0x508] ss:$16 sps:$4 sm:$0xff]  }
 0x18d   :  { %3658 = vmatpush1.bf16.msra.mxu0 %v5385_v27  ;;  %v5460_v2 = vld [vmem:[#allocation4 + $0x708] ss:$16 sps:$4 sm:$0xff]   ;;  %v5465_v3 = vld [vmem:[#allocation4 + $0x8ec] ss:$16 sps:$4 sm:$0xff]  }
 0x18e   :  { %3699 = vmatpush1.bf16.msra.mxu1 %v5388_v4  ;;  %3659 = vmatprep.subr.bf16.mxu0 %v5393_v36  ;;  %v5468_v27 = vld [vmem:[#allocation4 + $0xaec] ss:$16 sps:$4 sm:$0xff]   ;;  %v5463_v4 = vld [vmem:[#allocation4 + $0x8e8] ss:$16 sps:$4 sm:$0xff]  }
 0x18f   :  { %3700 = vmatprep.subr.bf16.mxu1 %v5396_v37  ;;  %v5466_v36 = vld [vmem:[#allocation4 + $0xae8] ss:$16 sps:$4 sm:$0xff]   ;;  %v5471_v37 = vld [vmem:[#allocation4 + $0x8cc] ss:$16 sps:$4 sm:$0xff]  }
 0x191   :  { %3660 = vmatpush1.bf16.msra.mxu0 %v5391_v5  ;;  %v5474_v5 = vld [vmem:[#allocation4 + $0xacc] ss:$16 sps:$4 sm:$0xff]  }
 0x192   :  { %3701 = vmatpush1.bf16.msra.mxu1 %v5394_v8  ;;  %3661 = vmatprep.subr.bf16.mxu0 %v5399_v9 }
 0x193   :  { %3702 = vmatprep.subr.bf16.mxu1 %v5402_v10 }
 0x195   :  { %3662 = vmatpush1.bf16.msra.mxu0 %v5397_v35  ;;  %v5469_v35 = vld [vmem:[#allocation4 + $0x8c8] ss:$16 sps:$4 sm:$0xff]  }
 0x196   :  { %3703 = vmatpush1.bf16.msra.mxu1 %v5400_v11  ;;  %3663 = vmatprep.subr.bf16.mxu0 %v5405_v40  ;;  %v5472_v11 = vld [vmem:[#allocation4 + $0xac8] ss:$16 sps:$4 sm:$0xff]  }
 0x197   :  { %3704 = vmatprep.subr.bf16.mxu1 %v5408_v12 }
 0x199   :  { %3664 = vmatpush1.bf16.msra.mxu0 %v5403_v13  ;;  %v5477_v13 = vld [vmem:[#allocation4 + $0x8ac] ss:$16 sps:$4 sm:$0xff]  }
 0x19a   :  { %3705 = vmatpush1.bf16.msra.mxu1 %v5406_v14  ;;  %3665 = vmatprep.subr.bf16.mxu0 %v5411_v15  ;;  %v5480_v14 = vld [vmem:[#allocation4 + $0xaac] ss:$16 sps:$4 sm:$0xff]  }
 0x19b   :  { %3706 = vmatprep.subr.bf16.mxu1 %v5414_v19 }
 0x19d   :  { %3666 = vmatpush1.bf16.msra.mxu0 %v5409_v20  ;;  %v5475_v20 = vld [vmem:[#allocation4 + $0x8a8] ss:$16 sps:$4 sm:$0xff]  }
 0x19e   :  { %3707 = vmatpush1.bf16.msra.mxu1 %v5412_v21  ;;  %3667 = vmatprep.subr.bf16.mxu0 %v5417_v26  ;;  %v5478_v21 = vld [vmem:[#allocation4 + $0xaa8] ss:$16 sps:$4 sm:$0xff]  }
 0x19f   :  { %3708 = vmatprep.subr.bf16.mxu1 %v5420_v28 }
 0x1a1   :  { %3668 = vmatpush2.bf16.msra.mxu0 %v5415_v29  ;;  %v5483_v29 = vld [vmem:[#allocation4 + $0x88c] ss:$16 sps:$4 sm:$0xff]  }
 0x1a2   :  { %3709 = vmatpush2.bf16.msra.mxu1 %v5418_v30  ;;  %3669 = vmatprep.subr.bf16.mxu0 %v5423_v31  ;;  %v5486_v30 = vld [vmem:[#allocation4 + $0xa8c] ss:$16 sps:$4 sm:$0xff]  }
 0x1a3   :  { %3710 = vmatprep.subr.bf16.mxu1 %v5426_v32  ;;  %v5492_v31 = vld [vmem:[#allocation4 + $0xa6c] ss:$16 sps:$4 sm:$0xff]   ;;  %v5487_v32 = vld [vmem:[#allocation4 + $0x868] ss:$16 sps:$4 sm:$0xff]  }
 0x1a5   :  { %3670 = vmatpush2.bf16.msra.mxu0 %v5421_v33  ;;  %v5490_v33 = vld [vmem:[#allocation4 + $0xa68] ss:$16 sps:$4 sm:$0xff]  }
 0x1a6   :  { %3711 = vmatpush2.bf16.msra.mxu1 %v5424_v47  ;;  %3671 = vmatprep.subr.bf16.mxu0 %v5429_v51  ;;  %v5495_v47 = vld [vmem:[#allocation4 + $0x84c] ss:$16 sps:$4 sm:$0xff]  }
 0x1a7   :  { %3712 = vmatprep.subr.bf16.mxu1 %v5432_v34  ;;  %v5498_v51 = vld [vmem:[#allocation4 + $0xa4c] ss:$16 sps:$4 sm:$0xff]   ;;  %v5493_v34 = vld [vmem:[#allocation4 + $0x848] ss:$16 sps:$4 sm:$0xff]  }
 0x1a9   :  { %3672 = vmatpush2.bf16.msra.mxu0 %v5427_v41  ;;  %v5496_v41 = vld [vmem:[#allocation4 + $0xa48] ss:$16 sps:$4 sm:$0xff]  }
 0x1aa   :  { %3713 = vmatpush2.bf16.msra.mxu1 %v5430_v42  ;;  %3673 = vmatprep.subr.bf16.mxu0 %v5435_v43  ;;  %v5501_v42 = vld [vmem:[#allocation4 + $0x82c] ss:$16 sps:$4 sm:$0xff]  }
 0x1ab   :  { %3714 = vmatprep.subr.bf16.mxu1 %v5438_v23  ;;  %v5504_v43 = vld [vmem:[#allocation4 + $0xa2c] ss:$16 sps:$4 sm:$0xff]   ;;  %v5499_v23 = vld [vmem:[#allocation4 + $0x828] ss:$16 sps:$4 sm:$0xff]  }
 0x1ad   :  { %3674 = vmatpush2.bf16.msra.mxu0 %v5433_v45  ;;  %v5502_v45 = vld [vmem:[#allocation4 + $0xa28] ss:$16 sps:$4 sm:$0xff]  }
 0x1ae   :  { %3715 = vmatpush2.bf16.msra.mxu1 %v5436_v46  ;;  %3675 = vmatprep.subr.bf16.mxu0 %v5441_v48  ;;  %v5507_v46 = vld [vmem:[#allocation4 + $0x80c] ss:$16 sps:$4 sm:$0xff]  }
 0x1af   :  { %3716 = vmatprep.subr.bf16.mxu1 %v5444_v49  ;;  %v5510_v48 = vld [vmem:[#allocation4 + $0xa0c] ss:$16 sps:$4 sm:$0xff]   ;;  %v5505_v49 = vld [vmem:[#allocation4 + $0x808] ss:$16 sps:$4 sm:$0xff]  }
 0x1b1   :  { %3676 = vmatpush2.bf16.msra.mxu0 %v5439_v50  ;;  %v5508_v50 = vld [vmem:[#allocation4 + $0xa08] ss:$16 sps:$4 sm:$0xff]  }
 0x1b2   :  { %3717 = vmatpush2.bf16.msra.mxu1 %v5442_v52  ;;  %3677 = vmatprep.subr.bf16.mxu0 %v5447_v54  ;;  %v5513_v52 = vld [vmem:[#allocation4 + $0x9ec] ss:$16 sps:$4 sm:$0xff]  }
 0x1b3   :  { %3718 = vmatprep.subr.bf16.mxu1 %v5450_v55  ;;  %v5516_v54 = vld [vmem:[#allocation4 + $0xbec] ss:$16 sps:$4 sm:$0xff]   ;;  %v5511_v55 = vld [vmem:[#allocation4 + $0x9e8] ss:$16 sps:$4 sm:$0xff]  }
 0x1b5   :  { %3678 = vmatpush2.bf16.msra.mxu0 %v5445_v56  ;;  %v5514_v56 = vld [vmem:[#allocation4 + $0xbe8] ss:$16 sps:$4 sm:$0xff]  }
 0x1b6   :  { %3719 = vmatpush2.bf16.msra.mxu1 %v5448_v57  ;;  %3679 = vmatprep.subr.bf16.mxu0 %v5453_v59  ;;  %v5519_v57 = vld [vmem:[#allocation4 + $0x9cc] ss:$16 sps:$4 sm:$0xff]  }
 0x1b7   :  { %3720 = vmatprep.subr.bf16.mxu1 %v5456_v60  ;;  %v5522_v59 = vld [vmem:[#allocation4 + $0xbcc] ss:$16 sps:$4 sm:$0xff]   ;;  %v5517_v60 = vld [vmem:[#allocation4 + $0x9c8] ss:$16 sps:$4 sm:$0xff]  }
 0x1b9   :  { %3680 = vmatpush2.bf16.msra.mxu0 %v5451_v61  ;;  %v5520_v61 = vld [vmem:[#allocation4 + $0xbc8] ss:$16 sps:$4 sm:$0xff]  }
 0x1ba   :  { %3721 = vmatpush2.bf16.msra.mxu1 %v5454_v6  ;;  %3681 = vmatprep.subr.bf16.mxu0 %v5459_v7  ;;  %v5525_v6 = vld [vmem:[#allocation4 + $0x9ac] ss:$16 sps:$4 sm:$0xff]  }
 0x1bb   :  { %3722 = vmatprep.subr.bf16.mxu1 %v5462_v62  ;;  %v5528_v7 = vld [vmem:[#allocation4 + $0xbac] ss:$16 sps:$4 sm:$0xff]   ;;  %v5523_v62 = vld [vmem:[#allocation4 + $0x9a8] ss:$16 sps:$4 sm:$0xff]  }
 0x1bd   :  { %3682 = vmatpush2.bf16.msra.mxu0 %v5457_v1  ;;  %v5526_v1 = vld [vmem:[#allocation4 + $0xba8] ss:$16 sps:$4 sm:$0xff]  }
 0x1be   :  { %3723 = vmatpush2.bf16.msra.mxu1 %v5460_v2  ;;  %3733 = vmatprep.subr.bf16.mxu0 %v5465_v3  ;;  %v5531_v2 = vld [vmem:[#allocation4 + $0x98c] ss:$16 sps:$4 sm:$0xff]  }
 0x1bf   :  { %3774 = vmatprep.subr.bf16.mxu1 %v5468_v27  ;;  %v5534_v3 = vld [vmem:[#allocation4 + $0xb8c] ss:$16 sps:$4 sm:$0xff]   ;;  %v5529_v27 = vld [vmem:[#allocation4 + $0x988] ss:$16 sps:$4 sm:$0xff]  }
 0x1c0   :  { %v3439_v8 = vpop.f32.mrf.mxu0  ;;  %3684 = vmatmul.mubr.bf16.vlgmr.msra.gmra.mxu0 %v5876_v16 }
 0x1c1   :  { %v3480_v9 = vpop.f32.mrf.mxu1  ;;  %3725 = vmatmul.mubr.bf16.vlgmr.msra.gmra.mxu1 %v5880_v17  ;;  %v3440_v10 = vadd.f32 %v3439_v8, %v5945_v58  ;;  %3734 = vmatpush1.bf16.msra.mxu0 %v5463_v4  ;;  %v5532_v4 = vld [vmem:[#allocation4 + $0xb88] ss:$16 sps:$4 sm:$0xff]  }
 0x1c2   :  { %3775 = vmatpush1.bf16.msra.mxu1 %v5466_v36  ;;  %v3441_v40 = vpop.f32.mrf.mxu0  ;;  %3735 = vmatprep.subr.bf16.mxu0 %v5471_v37  ;;  %v5537_v36 = vld [vmem:[#allocation4 + $0x96c] ss:$16 sps:$4 sm:$0xff]   ;;  %v5538_v8 = vld [vmem:[#allocation4 + $0xb68] ss:$16 sps:$4 sm:$0xff]  }
 0x1c3   :  { %v3482_v12 = vpop.f32.mrf.mxu1  ;;  %3776 = vmatprep.subr.bf16.mxu1 %v5474_v5  ;;  %v5955_v15 = vadd.f32 %v3480_v9, %v3440_v10  ;;  %v3442_v19 = vadd.f32 %v3441_v40, %v5950_v18  ;;  %3765 = vmatprep.mubr.bf16.mxu0 %v5888_v24  ;;  %v5481_v18 = vld [vmem:[#allocation4 + $0x888] ss:$16 sps:$4 sm:$0xff]   ;;  %v5540_v37 = vld [vmem:[#allocation4 + $0xb6c] ss:$16 sps:$4 sm:$0xff]  }
 0x1c4   :  { %3806 = vmatprep.mubr.bf16.mxu1 %v5892_v25  ;;  %v3443_v16 = vpop.f32.mrf.mxu0  ;;  %v5484_v24 = vld [vmem:[#allocation4 + $0xa88] ss:$16 sps:$4 sm:$0xff]   ;;  %v5489_v25 = vld [vmem:[#allocation4 + $0x86c] ss:$16 sps:$4 sm:$0xff]  }
 0x1c5   :  { %v3484_v17 = vpop.f32.mrf.mxu1  ;;  %v5960_v58 = vadd.f32 %v3482_v12, %v3442_v19  ;;  %3736 = vmatpush1.bf16.msra.mxu0 %v5469_v35  ;;  %v5535_v5 = vld [vmem:[#allocation4 + $0x968] ss:$16 sps:$4 sm:$0xff]   ;;  %v5543_v9 = vld [vmem:[#allocation4 + $0x94c] ss:$16 sps:$4 sm:$0xff]  }
 0x1c6   :  { %3777 = vmatpush1.bf16.msra.mxu1 %v5472_v11  ;;  %v3444_v26 = vpop.f32.mrf.mxu0  ;;  %3737 = vmatprep.subr.bf16.mxu0 %v5477_v13  ;;  %v5546_v10 = vld [vmem:[#allocation4 + $0xb4c] ss:$16 sps:$4 sm:$0xff]   ;;  %v5541_v35 = vld [vmem:[#allocation4 + $0x948] ss:$16 sps:$4 sm:$0xff]  }
 0x1c7   :  { %v3485_v28 = vpop.f32.mrf.mxu1  ;;  %3778 = vmatprep.subr.bf16.mxu1 %v5480_v14  ;;  %v5544_v11 = vld [vmem:[#allocation4 + $0xb48] ss:$16 sps:$4 sm:$0xff]   ;;  %v5549_v40 = vld [vmem:[#allocation4 + $0x92c] ss:$16 sps:$4 sm:$0xff]  }
 0x1c8   :  { %v5552_v12 = vld [vmem:[#allocation4 + $0xb2c] ss:$16 sps:$4 sm:$0xff]   ;;  %v5547_v13 = vld [vmem:[#allocation4 + $0x928] ss:$16 sps:$4 sm:$0xff]  }
 0x1c9   :  { %3738 = vmatpush1.bf16.msra.mxu0 %v5475_v20  ;;  %v5550_v14 = vld [vmem:[#allocation4 + $0xb28] ss:$16 sps:$4 sm:$0xff]   ;;  %v5555_v19 = vld [vmem:[#allocation4 + $0x90c] ss:$16 sps:$4 sm:$0xff]  }
 0x1ca   :  { %3779 = vmatpush1.bf16.msra.mxu1 %v5478_v21  ;;  %3739 = vmatprep.subr.bf16.mxu0 %v5483_v29  ;;  %v5558_v16 = vld [vmem:[#allocation4 + $0xb0c] ss:$16 sps:$4 sm:$0xff]   ;;  %v5553_v17 = vld [vmem:[#allocation4 + $0x908] ss:$16 sps:$4 sm:$0xff]  }
 0x1cb   :  { %3780 = vmatprep.subr.bf16.mxu1 %v5486_v30  ;;  %v5556_v20 = vld [vmem:[#allocation4 + $0xb08] ss:$16 sps:$4 sm:$0xff]   ;;  %v5561_v21 = vld [vmem:[#allocation4 + $0xcec] ss:$16 sps:$4 sm:$0xff]  }
 0x1cc   :  { %v5564_v26 = vld [vmem:[#allocation4 + $0xeec] ss:$16 sps:$4 sm:$0xff]   ;;  %v5559_v28 = vld [vmem:[#allocation4 + $0xce8] ss:$16 sps:$4 sm:$0xff]  }
 0x1cd   :  { %3740 = vmatpush1.bf16.msra.mxu0 %v5481_v18  ;;  %v5562_v29 = vld [vmem:[#allocation4 + $0xee8] ss:$16 sps:$4 sm:$0xff]   ;;  %v5567_v30 = vld [vmem:[#allocation4 + $0xccc] ss:$16 sps:$4 sm:$0xff]  }
 0x1ce   :  { %3781 = vmatpush1.bf16.msra.mxu1 %v5484_v24  ;;  %3741 = vmatprep.subr.bf16.mxu0 %v5489_v25  ;;  %v5570_v18 = vld [vmem:[#allocation4 + $0xecc] ss:$16 sps:$4 sm:$0xff]  }
 0x1cf   :  { %3782 = vmatprep.subr.bf16.mxu1 %v5492_v31 }
 0x1d1   :  { %3742 = vmatpush1.bf16.msra.mxu0 %v5487_v32  ;;  %v5565_v32 = vld [vmem:[#allocation4 + $0xcc8] ss:$16 sps:$4 sm:$0xff]  }
 0x1d2   :  { %3783 = vmatpush1.bf16.msra.mxu1 %v5490_v33  ;;  %3743 = vmatprep.subr.bf16.mxu0 %v5495_v47  ;;  %v5568_v33 = vld [vmem:[#allocation4 + $0xec8] ss:$16 sps:$4 sm:$0xff]  }
 0x1d3   :  { %3784 = vmatprep.subr.bf16.mxu1 %v5498_v51 }
 0x1d5   :  { %3744 = vmatpush1.bf16.msra.mxu0 %v5493_v34  ;;  %v5573_v34 = vld [vmem:[#allocation4 + $0xcac] ss:$16 sps:$4 sm:$0xff]  }
 0x1d6   :  { %3785 = vmatpush1.bf16.msra.mxu1 %v5496_v41  ;;  %3745 = vmatprep.subr.bf16.mxu0 %v5501_v42  ;;  %v5576_v41 = vld [vmem:[#allocation4 + $0xeac] ss:$16 sps:$4 sm:$0xff]  }
 0x1d7   :  { %3786 = vmatprep.subr.bf16.mxu1 %v5504_v43  ;;  %v5574_v43 = vld [vmem:[#allocation4 + $0xea8] ss:$16 sps:$4 sm:$0xff]  }
 0x1d9   :  { %3746 = vmatpush1.bf16.msra.mxu0 %v5499_v23 }
 0x1da   :  { %3787 = vmatpush1.bf16.msra.mxu1 %v5502_v45  ;;  %3747 = vmatprep.subr.bf16.mxu0 %v5507_v46  ;;  %v5579_v46 = vld [vmem:[#allocation4 + $0xc8c] ss:$16 sps:$4 sm:$0xff]  }
 0x1db   :  { %3788 = vmatprep.subr.bf16.mxu1 %v5510_v48  ;;  %v5582_v48 = vld [vmem:[#allocation4 + $0xe8c] ss:$16 sps:$4 sm:$0xff]  }
 0x1dd   :  { %3748 = vmatpush1.bf16.msra.mxu0 %v5505_v49  ;;  %v5577_v49 = vld [vmem:[#allocation4 + $0xc88] ss:$16 sps:$4 sm:$0xff]  }
 0x1de   :  { %3789 = vmatpush1.bf16.msra.mxu1 %v5508_v50  ;;  %3749 = vmatprep.subr.bf16.mxu0 %v5513_v52  ;;  %v5580_v50 = vld [vmem:[#allocation4 + $0xe88] ss:$16 sps:$4 sm:$0xff]  }
 0x1df   :  { %3790 = vmatprep.subr.bf16.mxu1 %v5516_v54  ;;  %v5583_v52 = vld [vmem:[#allocation4 + $0xc68] ss:$16 sps:$4 sm:$0xff]  }
 0x1e0   :  { %v5586_v54 = vld [vmem:[#allocation4 + $0xe68] ss:$16 sps:$4 sm:$0xff]  }
 0x1e1   :  { %3750 = vmatpush2.bf16.msra.mxu0 %v5511_v55  ;;  %v5591_v55 = vld [vmem:[#allocation4 + $0xc4c] ss:$16 sps:$4 sm:$0xff]  }
 0x1e2   :  { %3791 = vmatpush2.bf16.msra.mxu1 %v5514_v56  ;;  %3751 = vmatprep.subr.bf16.mxu0 %v5519_v57  ;;  %v5594_v56 = vld [vmem:[#allocation4 + $0xe4c] ss:$16 sps:$4 sm:$0xff]   ;;  %v5589_v57 = vld [vmem:[#allocation4 + $0xc48] ss:$16 sps:$4 sm:$0xff]  }
 0x1e3   :  { %3792 = vmatprep.subr.bf16.mxu1 %v5522_v59  ;;  %v5592_v59 = vld [vmem:[#allocation4 + $0xe48] ss:$16 sps:$4 sm:$0xff]  }
 0x1e5   :  { %3752 = vmatpush2.bf16.msra.mxu0 %v5517_v60  ;;  %v5597_v60 = vld [vmem:[#allocation4 + $0xc2c] ss:$16 sps:$4 sm:$0xff]  }
 0x1e6   :  { %3793 = vmatpush2.bf16.msra.mxu1 %v5520_v61  ;;  %3753 = vmatprep.subr.bf16.mxu0 %v5525_v6  ;;  %v5600_v61 = vld [vmem:[#allocation4 + $0xe2c] ss:$16 sps:$4 sm:$0xff]   ;;  %v5595_v6 = vld [vmem:[#allocation4 + $0xc28] ss:$16 sps:$4 sm:$0xff]  }
 0x1e7   :  { %3794 = vmatprep.subr.bf16.mxu1 %v5528_v7  ;;  %v5598_v7 = vld [vmem:[#allocation4 + $0xe28] ss:$16 sps:$4 sm:$0xff]  }
 0x1e9   :  { %3754 = vmatpush2.bf16.msra.mxu0 %v5523_v62  ;;  %v5603_v62 = vld [vmem:[#allocation4 + $0xc0c] ss:$16 sps:$4 sm:$0xff]  }
 0x1ea   :  { %3795 = vmatpush2.bf16.msra.mxu1 %v5526_v1  ;;  %3755 = vmatprep.subr.bf16.mxu0 %v5531_v2  ;;  %v5606_v1 = vld [vmem:[#allocation4 + $0xe0c] ss:$16 sps:$4 sm:$0xff]   ;;  %v5601_v2 = vld [vmem:[#allocation4 + $0xc08] ss:$16 sps:$4 sm:$0xff]  }
 0x1eb   :  { %3796 = vmatprep.subr.bf16.mxu1 %v5534_v3  ;;  %v5604_v3 = vld [vmem:[#allocation4 + $0xe08] ss:$16 sps:$4 sm:$0xff]  }
 0x1ed   :  { %3756 = vmatpush2.bf16.msra.mxu0 %v5529_v27  ;;  %v5609_v27 = vld [vmem:[#allocation4 + $0xdec] ss:$16 sps:$4 sm:$0xff]  }
 0x1ee   :  { %3797 = vmatpush2.bf16.msra.mxu1 %v5532_v4  ;;  %3757 = vmatprep.subr.bf16.mxu0 %v5537_v36  ;;  %v5612_v4 = vld [vmem:[#allocation4 + $0xfec] ss:$16 sps:$4 sm:$0xff]   ;;  %v5607_v36 = vld [vmem:[#allocation4 + $0xde8] ss:$16 sps:$4 sm:$0xff]  }
 0x1ef   :  { %3798 = vmatprep.subr.bf16.mxu1 %v5540_v37  ;;  %v5610_v37 = vld [vmem:[#allocation4 + $0xfe8] ss:$16 sps:$4 sm:$0xff]  }
 0x1f1   :  { %3758 = vmatpush2.bf16.msra.mxu0 %v5535_v5  ;;  %v5615_v5 = vld [vmem:[#allocation4 + $0xdcc] ss:$16 sps:$4 sm:$0xff]  }
 0x1f2   :  { %3799 = vmatpush2.bf16.msra.mxu1 %v5538_v8  ;;  %3759 = vmatprep.subr.bf16.mxu0 %v5543_v9  ;;  %v5618_v8 = vld [vmem:[#allocation4 + $0xfcc] ss:$16 sps:$4 sm:$0xff]   ;;  %v5613_v9 = vld [vmem:[#allocation4 + $0xdc8] ss:$16 sps:$4 sm:$0xff]  }
 0x1f3   :  { %3800 = vmatprep.subr.bf16.mxu1 %v5546_v10  ;;  %v5616_v10 = vld [vmem:[#allocation4 + $0xfc8] ss:$16 sps:$4 sm:$0xff]  }
 0x1f5   :  { %3760 = vmatpush2.bf16.msra.mxu0 %v5541_v35  ;;  %v5621_v35 = vld [vmem:[#allocation4 + $0xdac] ss:$16 sps:$4 sm:$0xff]  }
 0x1f6   :  { %3801 = vmatpush2.bf16.msra.mxu1 %v5544_v11  ;;  %3761 = vmatprep.subr.bf16.mxu0 %v5549_v40  ;;  %v5624_v11 = vld [vmem:[#allocation4 + $0xfac] ss:$16 sps:$4 sm:$0xff]   ;;  %v5619_v40 = vld [vmem:[#allocation4 + $0xda8] ss:$16 sps:$4 sm:$0xff]  }
 0x1f7   :  { %3802 = vmatprep.subr.bf16.mxu1 %v5552_v12  ;;  %v5622_v12 = vld [vmem:[#allocation4 + $0xfa8] ss:$16 sps:$4 sm:$0xff]  }
 0x1f9   :  { %3762 = vmatpush2.bf16.msra.mxu0 %v5547_v13  ;;  %v5627_v13 = vld [vmem:[#allocation4 + $0xd8c] ss:$16 sps:$4 sm:$0xff]  }
 0x1fa   :  { %3803 = vmatpush2.bf16.msra.mxu1 %v5550_v14  ;;  %3763 = vmatprep.subr.bf16.mxu0 %v5555_v19  ;;  %v5630_v14 = vld [vmem:[#allocation4 + $0xf8c] ss:$16 sps:$4 sm:$0xff]   ;;  %v5625_v19 = vld [vmem:[#allocation4 + $0xd88] ss:$16 sps:$4 sm:$0xff]  }
 0x1fb   :  { %3804 = vmatprep.subr.bf16.mxu1 %v5558_v16  ;;  %v5628_v16 = vld [vmem:[#allocation4 + $0xf88] ss:$16 sps:$4 sm:$0xff]  }
 0x1fd   :  { %3764 = vmatpush2.bf16.msra.mxu0 %v5553_v17  ;;  %v5633_v17 = vld [vmem:[#allocation4 + $0xd6c] ss:$16 sps:$4 sm:$0xff]  }
 0x1fe   :  { %3805 = vmatpush2.bf16.msra.mxu1 %v5556_v20  ;;  %3815 = vmatprep.subr.bf16.mxu0 %v5561_v21  ;;  %v5636_v20 = vld [vmem:[#allocation4 + $0xf6c] ss:$16 sps:$4 sm:$0xff]   ;;  %v5631_v21 = vld [vmem:[#allocation4 + $0xd68] ss:$16 sps:$4 sm:$0xff]  }
 0x1ff   :  { %3856 = vmatprep.subr.bf16.mxu1 %v5564_v26  ;;  %v5634_v26 = vld [vmem:[#allocation4 + $0xf68] ss:$16 sps:$4 sm:$0xff]  }
 0x200   :  { %v3521_v24 = vpop.f32.mrf.mxu0  ;;  %3766 = vmatmul.mubr.bf16.vlgmr.msra.gmra.mxu0 %v5902_v38 }
 0x201   :  { %v3562_v25 = vpop.f32.mrf.mxu1  ;;  %3807 = vmatmul.mubr.bf16.vlgmr.msra.gmra.mxu1 %v5906_v39  ;;  %v3522_v31 = vadd.f32 %v3521_v24, %v5955_v15  ;;  %3816 = vmatpush1.bf16.msra.mxu0 %v5559_v28  ;;  %v5571_v15 = vld [vmem:[#allocation4 + $0xca8] ss:$16 sps:$4 sm:$0xff]   ;;  %v5639_v28 = vld [vmem:[#allocation4 + $0xd4c] ss:$16 sps:$4 sm:$0xff]  }
 0x202   :  { %3857 = vmatpush1.bf16.msra.mxu1 %v5562_v29  ;;  %v5965_v47 = vpop.f32.mrf.mxu0  ;;  %3817 = vmatprep.subr.bf16.mxu0 %v5567_v30  ;;  %v5642_v29 = vld [vmem:[#allocation4 + $0xf4c] ss:$16 sps:$4 sm:$0xff]   ;;  %v5637_v30 = vld [vmem:[#allocation4 + $0xd48] ss:$16 sps:$4 sm:$0xff]  }
 0x203   :  { %v5967_v51 = vpop.f32.mrf.mxu1  ;;  %3858 = vmatprep.subr.bf16.mxu1 %v5570_v18  ;;  %v5969_v42 = vadd.f32 %v3562_v25, %v3522_v31  ;;  %3847 = vmatprep.mubr.bf16.mxu0 %v5912_v44  ;;  %v5585_v44 = vld [vmem:[#allocation4 + $0xc6c] ss:$16 sps:$4 sm:$0xff]   ;;  %v5640_v18 = vld [vmem:[#allocation4 + $0xf48] ss:$16 sps:$4 sm:$0xff]   ;;  %v3524_v31 = vadd.f32 %v5965_v47, %v5960_v58  ;;  %v619_v47 = vsub.s32 3, %v5922_v53 }
 0x204   :  { %3888 = vmatprep.mubr.bf16.mxu1 %v5916_v22  ;;  %v3525_v38 = vpop.f32.mrf.mxu0  ;;  %v5588_v22 = vld [vmem:[#allocation4 + $0xe6c] ss:$16 sps:$4 sm:$0xff]  }
 0x205   :  { %v3566_v39 = vpop.f32.mrf.mxu1  ;;  %3818 = vmatpush1.bf16.msra.mxu0 %v5565_v32  ;;  %v5645_v24 = vld [vmem:[#allocation4 + $0xd2c] ss:$16 sps:$4 sm:$0xff]   ;;  %v5643_v32 = vld [vmem:[#allocation4 + $0xd28] ss:$16 sps:$4 sm:$0xff]   ;;  %v3565_v38 = vadd.f32 %v5967_v51, %v3524_v31 }
 0x206   :  { %3859 = vmatpush1.bf16.msra.mxu1 %v5568_v33  ;;  %v3526_v23 = vpop.f32.mrf.mxu0  ;;  %3819 = vmatprep.subr.bf16.mxu0 %v5573_v34  ;;  %v5648_v25 = vld [vmem:[#allocation4 + $0xf2c] ss:$16 sps:$4 sm:$0xff]   ;;  %v5646_v33 = vld [vmem:[#allocation4 + $0xf28] ss:$16 sps:$4 sm:$0xff]  }
 0x207   :  { %v3567_v45 = vpop.f32.mrf.mxu1  ;;  %3860 = vmatprep.subr.bf16.mxu1 %v5576_v41  ;;  %v5651_v34 = vld [vmem:[#allocation4 + $0xd0c] ss:$16 sps:$4 sm:$0xff]   ;;  %v5649_v39 = vld [vmem:[#allocation4 + $0xd08] ss:$16 sps:$4 sm:$0xff]   ;;  %v3898_v58 = vmax.f32 %v3565_v38, 0.0 }
 0x208   :  { %v5654_v41 = vld [vmem:[#allocation4 + $0xf0c] ss:$16 sps:$4 sm:$0xff]   ;;  %v5687_v45 = vld [vmem:[#allocation6] sm:$0xf] }
 0x209   :  { %3820 = vmatpush1.bf16.msra.mxu0 %v5571_v15  ;;  %v5652_v15 = vld [vmem:[#allocation4 + $0xf08] ss:$16 sps:$4 sm:$0xff]   ;;  %v5655_v23 = vld [vmem:[#allocation7 + $0x78] sm:$0xff]   ;;  %v3902_v51 = vpack.c.bf16 %v3898_v58, %v3898_v58 }
 0x20a   :  { %3861 = vmatpush1.bf16.msra.mxu1 %v5574_v43  ;;  %3821 = vmatprep.subr.bf16.mxu0 %v5579_v46  ;;  %v615_v43 = vsub.s32 2, %v5922_v53 }
 0x20b   :  { %3862 = vmatprep.subr.bf16.mxu1 %v5582_v48  ;;  %v5656_v48 = vld [vmem:[#allocation7 + $0x38] sm:$0xff]  }
 0x20c   :  { %v616_v46 = vrot.slane %v5687_v45, %v615_v43  ;;  %v5686_v43 = vld [vmem:[#allocation7 + $0x80] sm:$0xff]  }
 0x20d   :  { %3822 = vmatpush1.bf16.msra.mxu0 %v5577_v49  ;;  %v5657_v49 = vld [vmem:[#allocation7 + $0x70] sm:$0xff]  }
 0x20e   :  { %3863 = vmatpush1.bf16.msra.mxu1 %v5580_v50  ;;  %3823 = vmatprep.subr.bf16.mxu0 %v5585_v44  ;;  %v620_v50 = vrot.slane %v5687_v45, %v619_v47 }
 0x20f   :  { %3864 = vmatprep.subr.bf16.mxu1 %v5588_v22 }
 0x211   :  { %3824 = vmatpush1.bf16.msra.mxu0 %v5583_v52 }
 0x212   :  { %3865 = vmatpush1.bf16.msra.mxu1 %v5586_v54  ;;  %3825 = vmatprep.subr.bf16.mxu0 %v5591_v55  ;;  %v5658_v54 = vld [vmem:[#allocation7 + $0x30] sm:$0xff]  }
 0x213   :  { %3866 = vmatprep.subr.bf16.mxu1 %v5594_v56  ;;  %v5659_v56 = vld [vmem:[#allocation7 + $0x68] sm:$0xff]  }
 0x215   :  { %3826 = vmatpush1.bf16.msra.mxu0 %v5589_v57 }
 0x216   :  { %3867 = vmatpush1.bf16.msra.mxu1 %v5592_v59  ;;  %3827 = vmatprep.subr.bf16.mxu0 %v5597_v60 }
 0x217   :  { %3868 = vmatprep.subr.bf16.mxu1 %v5600_v61 }
 0x219   :  { %3828 = vmatpush1.bf16.msra.mxu0 %v5595_v6 }
 0x21a   :  { %3869 = vmatpush1.bf16.msra.mxu1 %v5598_v7  ;;  %3829 = vmatprep.subr.bf16.mxu0 %v5603_v62  ;;  %v5660_v7 = vld [vmem:[#allocation7 + $0x28] sm:$0xff]   ;;  %v5661_v62 = vld [vmem:[#allocation7 + $0x60] sm:$0xff]  }
 0x21b   :  { %3870 = vmatprep.subr.bf16.mxu1 %v5606_v1 }
 0x21d   :  { %3830 = vmatpush1.bf16.msra.mxu0 %v5601_v2  ;;  %v5672_v2 = vld [vmem:[#allocation7 + $0xb8] sm:$0xff]  }
 0x21e   :  { %3871 = vmatpush1.bf16.msra.mxu1 %v5604_v3  ;;  %3831 = vmatprep.subr.bf16.mxu0 %v5609_v27  ;;  %v5673_v3 = vld [vmem:[#allocation7 + $0xf0] sm:$0xff]   ;;  %v5662_v27 = vld [vmem:[#allocation7 + $0x20] sm:$0xff]  }
 0x21f   :  { %3872 = vmatprep.subr.bf16.mxu1 %v5612_v4  ;;  %v5674_v4 = vld [vmem:[#allocation7 + $0xb0] sm:$0xff]  }
 0x221   :  { %3832 = vmatpush2.bf16.msra.mxu0 %v5607_v36  ;;  %v5663_v36 = vld [vmem:[#allocation7 + $0x58] sm:$0xff]  }
 0x222   :  { %3873 = vmatpush2.bf16.msra.mxu1 %v5610_v37  ;;  %3833 = vmatprep.subr.bf16.mxu0 %v5615_v5  ;;  %v5675_v37 = vld [vmem:[#allocation7 + $0xe8] sm:$0xff]   ;;  %v5664_v5 = vld [vmem:[#allocation7 + $0x18] sm:$0xff]  }
 0x223   :  { %3874 = vmatprep.subr.bf16.mxu1 %v5618_v8  ;;  %v5676_v8 = vld [vmem:[#allocation7 + $0xa8] sm:$0xff]  }
 0x225   :  { %3834 = vmatpush2.bf16.msra.mxu0 %v5613_v9  ;;  %v5665_v9 = vld [vmem:[#allocation7 + $0x50] sm:$0xff]  }
 0x226   :  { %3875 = vmatpush2.bf16.msra.mxu1 %v5616_v10  ;;  %3835 = vmatprep.subr.bf16.mxu0 %v5621_v35  ;;  %v5677_v10 = vld [vmem:[#allocation7 + $0xe0] sm:$0xff]   ;;  %v5666_v35 = vld [vmem:[#allocation7 + $0x10] sm:$0xff]  }
 0x227   :  { %3876 = vmatprep.subr.bf16.mxu1 %v5624_v11  ;;  %v5678_v11 = vld [vmem:[#allocation7 + $0xa0] sm:$0xff]  }
 0x229   :  { %3836 = vmatpush2.bf16.msra.mxu0 %v5619_v40  ;;  %v5667_v40 = vld [vmem:[#allocation7 + $0x48] sm:$0xff]  }
 0x22a   :  { %3877 = vmatpush2.bf16.msra.mxu1 %v5622_v12  ;;  %3837 = vmatprep.subr.bf16.mxu0 %v5627_v13  ;;  %v5679_v12 = vld [vmem:[#allocation7 + $0xd8] sm:$0xff]   ;;  %v5668_v13 = vld [vmem:[#allocation7 + $0x8] sm:$0xff]  }
 0x22b   :  { %3878 = vmatprep.subr.bf16.mxu1 %v5630_v14  ;;  %v5680_v14 = vld [vmem:[#allocation7 + $0x98] sm:$0xff]  }
 0x22d   :  { %3838 = vmatpush2.bf16.msra.mxu0 %v5625_v19  ;;  %v5669_v19 = vld [vmem:[#allocation7 + $0x40] sm:$0xff]  }
 0x22e   :  { %3879 = vmatpush2.bf16.msra.mxu1 %v5628_v16  ;;  %3839 = vmatprep.subr.bf16.mxu0 %v5633_v17  ;;  %v5670_v16 = vld [vmem:[#allocation7] sm:$0xff]   ;;  %v3897_v17 = vmax.f32 %v5969_v42, 0.0 }
 0x22f   :  { %3880 = vmatprep.subr.bf16.mxu1 %v5636_v20 }
 0x230   :  { %v3901_v20 = vpack.c.bf16 %v3897_v17, %v3897_v17 }
 0x231   :  { %3840 = vmatpush2.bf16.msra.mxu0 %v5631_v21  ;;  %v5681_v21 = vld [vmem:[#allocation7 + $0xd0] sm:$0xff]  }
 0x232   :  { %3881 = vmatpush2.bf16.msra.mxu1 %v5634_v26  ;;  %3841 = vmatprep.subr.bf16.mxu0 %v5639_v28  ;;  %v5682_v26 = vld [vmem:[#allocation7 + $0x90] sm:$0xff]  }
 0x233   :  { %3882 = vmatprep.subr.bf16.mxu1 %v5642_v29 }
 0x235   :  { %3842 = vmatpush2.bf16.msra.mxu0 %v5637_v30 }
 0x236   :  { %3883 = vmatpush2.bf16.msra.mxu1 %v5640_v18  ;;  %3843 = vmatprep.subr.bf16.mxu0 %v5645_v24 }
 0x237   :  { %3884 = vmatprep.subr.bf16.mxu1 %v5648_v25  ;;  %v5683_v25 = vld [vmem:[#allocation7 + $0xc8] sm:$0xff]  }
 0x239   :  { %3844 = vmatpush2.bf16.msra.mxu0 %v5643_v32 }
 0x23a   :  { %3885 = vmatpush2.bf16.msra.mxu1 %v5646_v33  ;;  %3845 = vmatprep.subr.bf16.mxu0 %v5651_v34  ;;  %v5684_v33 = vld [vmem:[#allocation7 + $0x88] sm:$0xff]  }
 0x23b   :  { %3886 = vmatprep.subr.bf16.mxu1 %v5654_v41 }
 0x23d   :  { %3846 = vmatpush2.bf16.msra.mxu0 %v5649_v39 }
 0x23e   :  { %3887 = vmatpush2.bf16.msra.mxu1 %v5652_v15  ;;  %4818 = vmatprep.subr.bf16.mxu0 %v5655_v23  ;;  %v5685_v15 = vld [vmem:[#allocation7 + $0xc0] sm:$0xff]  }
 0x240   :  { %v3603_v44 = vpop.f32.mrf.mxu0  ;;  %3848 = vmatmul.mubr.bf16.vlgmr.msra.gmra.mxu0 %v5928_v63 }
 0x241   :  { %v3644_v22 = vpop.f32.mrf.mxu1  ;;  %3889 = vmatmul.mubr.bf16.vlgmr.msra.gmra.mxu1 %v5932_v0  ;;  %v3604_v52 = vadd.f32 %v3603_v44, %v616_v46  ;;  %4819 = vmatpush3.bf16.msra.mxu0 %v5656_v48  ;;  %v5671_v0 = vld [vmem:[#allocation7 + $0xf8] sm:$0xff]  }
 0x242   :  { %4200 = vmatprep.mubr.bf16.mxu0 %v3902_v51  ;;  %v3605_v53 = vpop.f32.mrf.mxu0  ;;  %4820 = vmatprep.subr.bf16.mxu0 %v5657_v49 }
 0x243   :  { %v3646_v55 = vpop.f32.mrf.mxu1  ;;  %v3645_v57 = vadd.f32 %v3644_v22, %v3604_v52  ;;  %v3606_v59 = vadd.f32 %v3605_v53, %v620_v50  ;;  %4840 = vmatprep.subr.bf16.mxu1 %v5671_v0 }
 0x244   :  { %v3607_v60 = vpop.f32.mrf.mxu0  ;;  %4841 = vmatpush3.bf16.msra.mxu1 %v5672_v2 }
 0x245   :  { %v3648_v61 = vpop.f32.mrf.mxu1  ;;  %v3647_v6 = vadd.f32 %v3646_v55, %v3606_v59  ;;  %4821 = vmatpush3.bf16.msra.mxu0 %v5658_v54  ;;  %4842 = vmatprep.subr.bf16.mxu1 %v5673_v3 }
 0x246   :  { %v3608_v1 = vpop.f32.mrf.mxu0  ;;  %4822 = vmatprep.subr.bf16.mxu0 %v5659_v56 }
 0x247   :  { %v3649_v63 = vpop.f32.mrf.mxu1 }
 0x248   :  { %4843 = vmatpush3.bf16.msra.mxu1 %v5674_v4 }
 0x249   :  { %4823 = vmatpush3.bf16.msra.mxu0 %v5660_v7  ;;  %4844 = vmatprep.subr.bf16.mxu1 %v5675_v37 }
 0x24a   :  { %4824 = vmatprep.subr.bf16.mxu0 %v5661_v62 }
 0x24c   :  { %4845 = vmatpush3.bf16.msra.mxu1 %v5676_v8  ;;  %v4785_v8 = vld [vmem:[#allocation9] ss:$0 sm:$0xff] }
 0x24d   :  { %4825 = vmatpush3.bf16.msra.mxu0 %v5662_v27  ;;  %4846 = vmatprep.subr.bf16.mxu1 %v5677_v10 }
 0x24e   :  { %4826 = vmatprep.subr.bf16.mxu0 %v5663_v36 }
 0x250   :  { %4847 = vmatpush3.bf16.msra.mxu1 %v5678_v11 }
 0x251   :  { %4827 = vmatpush3.bf16.msra.mxu0 %v5664_v5  ;;  %4848 = vmatprep.subr.bf16.mxu1 %v5679_v12 }
 0x252   :  { %4828 = vmatprep.subr.bf16.mxu0 %v5665_v9 }
 0x254   :  { %4849 = vmatpush3.bf16.msra.mxu1 %v5680_v14 }
 0x255   :  { %4829 = vmatpush3.bf16.msra.mxu0 %v5666_v35  ;;  %4850 = vmatprep.subr.bf16.mxu1 %v5681_v21 }
 0x256   :  { %4830 = vmatprep.subr.bf16.mxu0 %v5667_v40 }
 0x258   :  { %4851 = vmatpush3.bf16.msra.mxu1 %v5682_v26 }
 0x259   :  { %4831 = vmatpush3.bf16.msra.mxu0 %v5668_v13  ;;  %4852 = vmatprep.subr.bf16.mxu1 %v5683_v25 }
 0x25a   :  { %4832 = vmatprep.subr.bf16.mxu0 %v5669_v19 }
 0x25c   :  { %4853 = vmatpush3.bf16.msra.mxu1 %v5684_v33 }
 0x25d   :  { %4833 = vmatpush3.bf16.msra.mxu0 %v5670_v16  ;;  %4854 = vmatprep.subr.bf16.mxu1 %v5685_v15 }
 0x260   :  { %4201 = vmatmul.mubr.bf16.vlgmr.msra.gmra.mxu0 %v3901_v20  ;;  %4855 = vmatpush3.bf16.msra.mxu1 %v5686_v43 }
 0x280   :  { %v3685_v28 = vpop.f32.mrf.mxu0 }
 0x281   :  { %v3726_v29 = vpop.f32.mrf.mxu1  ;;  %v3686_v30 = vadd.f32 %v3685_v28, %v3645_v57 }
 0x282   :  { %v3687_v18 = vpop.f32.mrf.mxu0 }
 0x283   :  { %v3728_v24 = vpop.f32.mrf.mxu1  ;;  %v3727_v31 = vadd.f32 %v3726_v29, %v3686_v30  ;;  %v3688_v32 = vadd.f32 %v3687_v18, %v3647_v6 }
 0x284   :  { %v3689_v34 = vpop.f32.mrf.mxu0 }
 0x285   :  { %v3730_v41 = vpop.f32.mrf.mxu1  ;;  %v3729_v42 = vadd.f32 %v3728_v24, %v3688_v32 }
 0x286   :  { %v3690_v38 = vpop.f32.mrf.mxu0 }
 0x287   :  { %v3731_v39 = vpop.f32.mrf.mxu1 }
 0x2c0   :  { %v3767_v23 = vpop.f32.mrf.mxu0 }
 0x2c1   :  { %v3808_v58 = vpop.f32.mrf.mxu1  ;;  %v3768_v47 = vadd.f32 %v3767_v23, %v3727_v31 }
 0x2c2   :  { %v3769_v45 = vpop.f32.mrf.mxu0 }
 0x2c3   :  { %v3810_v46 = vpop.f32.mrf.mxu1  ;;  %v3809_v48 = vadd.f32 %v3808_v58, %v3768_v47  ;;  %v3770_v22 = vadd.f32 %v3769_v45, %v3729_v42 }
 0x2c4   :  { %v3771_v49 = vpop.f32.mrf.mxu0 }
 0x2c5   :  { %v3812_v51 = vpop.f32.mrf.mxu1  ;;  %v3811_v53 = vadd.f32 %v3810_v46, %v3770_v22 }
 0x2c6   :  { %v3772_v50 = vpop.f32.mrf.mxu0 }
 0x2c7   :  { %v3813_v44 = vpop.f32.mrf.mxu1 }
 0x300   :  { %v3849_v52 = vpop.f32.mrf.mxu0 }
 0x301   :  { %v3890_v54 = vpop.f32.mrf.mxu1  ;;  %v3850_v55 = vadd.f32 %v3849_v52, %v3809_v48 }
 0x302   :  { %v3851_v56 = vpop.f32.mrf.mxu0 }
 0x303   :  { %v3892_v57 = vpop.f32.mrf.mxu1  ;;  %v3891_v59 = vadd.f32 %v3890_v54, %v3850_v55  ;;  %v3852_v60 = vadd.f32 %v3851_v56, %v3811_v53 }
 0x304   :  { %v3853_v61 = vpop.f32.mrf.mxu0 }
 0x305   :  { %v3894_v6 = vpop.f32.mrf.mxu1  ;;  %v3893_v7 = vadd.f32 %v3892_v57, %v3852_v60  ;;  %v3899_v62 = vmax.f32 %v3891_v59, 0.0 }
 0x306   :  { %v3854_v1 = vpop.f32.mrf.mxu0 }
 0x307   :  { %v3895_v63 = vpop.f32.mrf.mxu1  ;;  %v3900_v0 = vmax.f32 %v3893_v7, 0.0  ;;  %v3903_v3 = vpack.c.bf16 %v3899_v62, %v3899_v62 }
 0x309   :  { %v3904_v2 = vpack.c.bf16 %v3900_v0, %v3900_v0 }
 0x30b   :  { %4240 = vmatprep.mubr.bf16.mxu1 %v3904_v2 }
 0x30c   :  { %4241 = vmatmul.mubr.bf16.vlgmr.msra.gmra.mxu1 %v3903_v3 }
 0x320   :  { %v4834_v27 = vpop.f32.mrf.mxu0 }
 0x322   :  { %v4835_v4 = vpop.f32.mrf.mxu0 }
 0x323   :  { %v4836_v36 = vadd.f32 %v4835_v4, %v4834_v27 }
 0x324   :  { %v4837_v37 = vpop.f32.mrf.mxu0 }
 0x325   :  { %v4203_v35 = vadd.f32 %v4836_v36, %v4785_v8 }
 0x326   :  { %v4838_v5 = vpop.f32.mrf.mxu0 }
 0x3cc   :  { %v4856_v9 = vpop.f32.mrf.mxu1 }
 0x3ce   :  { %v4857_v10 = vpop.f32.mrf.mxu1 }
 0x3cf   :  { %v4858_v11 = vadd.f32 %v4857_v10, %v4856_v9 }
 0x3d0   :  { %v4859_v40 = vpop.f32.mrf.mxu1 }
 0x3d1   :  { %v4243_v12 = vadd.f32 %v4858_v11, %v4203_v35 }
 0x3d2   :  { %v4860_v13 = vpop.f32.mrf.mxu1 }
 0x3d3   :  { %v4248_v14 = vpack.c.bf16 %v4243_v12, %v4243_v12 }
 0x3d5   :  { %4249 = vst [vmem:[%s5989_s5] sm:$0xf] %v4248_v14 }
 0x3d6   :  { %4254 = vsyncpa [#allocation3], 1 }
 0x3d7   :  { %4255 = vsyncpa [#allocation5], 1 }
 0x3d8   :  { %4256 = vsyncpa [#allocation8], 1 }

</bundles_post_ra>
